<compile_context>
chip_gen: v5e
topology: v5e:2x2
jax: 0.10.0
libtpu: 0.0.40
codegen_flags: <defaults>
</compile_context>

<pallas_src>
from functools import lru_cache, partial

import numpy as np
import jax
import jax.numpy as jnp
from jax.experimental import pallas as pl
from jax.experimental.pallas import tpu as pltpu

GROUPS = 16          # nn.GroupNorm(16, C) -> C % 16 == 0
KSIZE = 7
PAD = KSIZE // 2
EPS = 1e-5


def bfm_kernel(x_ref, pool_ref, invlen_ref, shmat_ref, wexp_ref, sumk_ref,
               sela_ref, selb_ref, gavg_ref, gb_ref, r2_ref, o_ref, *, h_size):
    f32 = jnp.float32
    x = x_ref[...]                                                     # (BC, HW) f32

    # 1) Pool over W (H-branch lanes [0,H)) and over H (W-branch lanes [H,H+W))
    #    with one 0/1 matmul; the exact 1/W, 1/H scaling is a VPU row multiply.
    v = jnp.dot(x, pool_ref[...].astype(f32), preferred_element_type=f32)
    v = v * invlen_ref[...]                                            # (BC, LC)

    # 2) Depthwise 7-tap "same" conv (branches independent, zero padding baked
    #    into the small shift constant): shift copies -> per-channel tap
    #    weights (VPU) -> sum over taps.
    vk = jnp.dot(v, shmat_ref[...].astype(f32),
                 preferred_element_type=f32)                           # (BC, K*LC)
    conv = jnp.dot(vk * wexp_ref[...], sumk_ref[...].astype(f32),
                   preferred_element_type=f32)                         # (BC, LC)

    # 3) GroupNorm(16, C) per sample & per branch. sel_a/sel_b write disjoint
    #    columns so a VPU add packs [m1_h, m1_w, m2_h, m2_w]; GAVG (= gm_t@gm,
    #    0/1) averages over each group and broadcasts back to channels in ONE
    #    matmul. Single-pass biased variance (matches PyTorch GN), clamped.
    s1 = jnp.dot(conv, sela_ref[...], preferred_element_type=f32)      # (BC, 4)
    s2 = jnp.dot(conv * conv, selb_ref[...], preferred_element_type=f32)
    ch = jnp.dot(gavg_ref[...].astype(f32), s1 + s2,
                 preferred_element_type=f32)                           # (BC, 4)
    mean = ch[:, 0:2]                                                  # (BC, 2)
    var = jnp.maximum(ch[:, 2:4] - mean * mean, 0.0)
    rstd = jax.lax.rsqrt(var + EPS)                                    # (BC, 2)

    gb = gb_ref[...]                                                   # (BC, 2)
    scale = gb[:, 0:1] * rstd                                          # gamma * rstd
    shift = gb[:, 1:2] - mean * scale                                  # beta - mean*scale

    # 4) Lane-expand the per-(channel, branch) affine on the VPU (iota select
    #    instead of K=2 matmuls), apply, sigmoid.
    lane = jax.lax.broadcasted_iota(jnp.int32, (1, conv.shape[1]), 1)
    is_h = lane < h_size
    scale_l = jnp.where(is_h, scale[:, 0:1], scale[:, 1:2])            # (BC, LC)
    shift_l = jnp.where(is_h, shift[:, 0:1], shift[:, 1:2])
    a = jax.nn.sigmoid(conv * scale_l + shift_l)                       # (BC, LC)

    # 5) One fused broadcast matmul -> [a_h | a_w] lanes; split at the
    #    vreg-aligned HW boundary; modulate; unmasked lane-dense store.
    ahw = jnp.dot(a, r2_ref[...].astype(f32), preferred_element_type=f32)  # (BC, 2*HW)
    hw = x.shape[1]
    o_ref[...] = (x * ahw[:, :hw] * ahw[:, hw:]).astype(o_ref.dtype)


@lru_cache(maxsize=None)
def _bfm_constants(b, c, h, w):
    """Shape-only constant matrices, built once per shape on the host."""
    cpg = c // GROUPS
    hw, lc = h * w, h + w

    # POOL01 (HW, LC): 0/1 pooling membership (scaling lives in INVLEN so the
    # constant is exact in bf16 for any H, W).
    pool01 = np.zeros((hw, lc), np.float32)
    for j in range(h):
        pool01[j * w:(j + 1) * w, j] = 1.0            # H-branch: mean over W
    for j in range(w):
        pool01[j::w, h + j] = 1.0                     # W-branch: mean over H
    invlen = np.zeros((1, lc), np.float32)
    invlen[0, :h] = 1.0 / w
    invlen[0, h:] = 1.0 / h

    # SHMAT (LC, K*LC): tap-shifted copies with per-branch zero "same" padding.
    shmat = np.zeros((lc, KSIZE * lc), np.float32)
    for k in range(KSIZE):
        d = k - PAD
        for j in range(h):
            p = j + d
            if 0 <= p < h:
                shmat[p, k * lc + j] = 1.0
        for j in range(w):
            p = j + d
            if 0 <= p < w:
                shmat[h + p, k * lc + h + j] = 1.0

    # SUMK (K*LC, LC): sum the 7 weighted tap copies per output lane.
    sumk = np.tile(np.eye(lc, dtype=np.float32), (KSIZE, 1))

    # SEL_A / SEL_B (LC, 4): per-branch lane sums with the GroupNorm
    # 1/(cpg*len) folded in; disjoint columns so s1 + s2 packs
    # [m1_h, m1_w, m2_h, m2_w] without an in-kernel concatenate.
    sel_a = np.zeros((lc, 4), np.float32)
    sel_a[:h, 0] = 1.0 / (cpg * h)
    sel_a[h:, 1] = 1.0 / (cpg * w)
    sel_b = np.zeros((lc, 4), np.float32)
    sel_b[:h, 2] = 1.0 / (cpg * h)
    sel_b[h:, 3] = 1.0 / (cpg * w)

    # GAVG (BC, BC) = gm_t @ gm: average over each (sample, group) and
    # broadcast back to channels, fused into one 0/1 matmul.
    base = np.repeat(np.eye(GROUPS, dtype=np.float32), cpg, axis=1)    # (G, C)
    gm = np.kron(np.eye(b, dtype=np.float32), base)                    # (BG, BC)
    gavg = gm.T @ gm                                                   # (BC, BC) 0/1

    # R2 (LC, 2*HW): lanes [0,HW) broadcast the H-branch gate to all (h, w),
    # lanes [HW, 2*HW) broadcast the W-branch gate.
    r2 = np.zeros((lc, 2 * hw), np.float32)
    for hh in range(h):
        r2[hh, hh * w:(hh + 1) * w] = 1.0
    for ww in range(w):
        r2[h + ww, hw + ww::w] = 1.0

    return pool01, invlen, shmat, sumk, sel_a, sel_b, gavg, r2


@jax.jit
def bfm_forward(x, conv_w, gamma, beta):
    b, c, h, w = x.shape
    assert c % GROUPS == 0, "GroupNorm(16, C) requires C % 16 == 0"
    hw, lc = h * w, h + w
    bc = b * c

    pool01, invlen, shmat, sumk, sel_a, sel_b, gavg, r2 = _bfm_constants(b, c, h, w)

    bf16, f32 = jnp.bfloat16, jnp.float32
    # Exact 0/1 constants -> bf16 (half the DMA, no accuracy loss); the tiny
    # non-0/1 constants stay f32. All are jaxpr constants (folded by jit).
    pool01 = jnp.asarray(pool01, bf16)
    shmat = jnp.asarray(shmat, bf16)
    sumk = jnp.asarray(sumk, bf16)
    gavg = jnp.asarray(gavg, bf16)
    r2 = jnp.asarray(r2, bf16)
    invlen = jnp.asarray(invlen, f32)
    sel_a = jnp.asarray(sel_a, f32)
    sel_b = jnp.asarray(sel_b, f32)

    # Per-channel parameters tiled across the batch rows (tiny, fused by XLA).
    w_exp = jnp.repeat(jnp.tile(conv_w.astype(f32), (b, 1)), lc, axis=1)   # (BC, K*LC)
    gb = jnp.tile(jnp.stack([gamma, beta], axis=1).astype(f32), (b, 1))    # (BC, 2)

    x_flat = x.reshape(bc, hw)                                             # lane-dense

    def spec2(shape):
        return pl.BlockSpec(shape, lambda i: (0, 0))

    out_flat = pl.pallas_call(
        partial(bfm_kernel, h_size=h),
        out_shape=jax.ShapeDtypeStruct((bc, hw), x.dtype),
        grid=(1,),                                   # whole batch in one step
        in_specs=[
            spec2((bc, hw)),            # x_flat
            spec2((hw, lc)),            # pool01
            spec2((1, lc)),             # invlen
            spec2((lc, KSIZE * lc)),    # shmat
            spec2((bc, KSIZE * lc)),    # w_exp
            spec2((KSIZE * lc, lc)),    # sumk
            spec2((lc, 4)),             # sel_a
            spec2((lc, 4)),             # sel_b
            spec2((bc, bc)),            # gavg
            spec2((bc, 2)),             # gb (gamma | beta)
            spec2((lc, 2 * hw)),        # r2
        ],
        out_specs=spec2((bc, hw)),
        compiler_params=pltpu.CompilerParams(
            dimension_semantics=("arbitrary",)),
    )(x_flat, pool01, invlen, shmat, w_exp, sumk, sel_a, sel_b, gavg, gb, r2)

    return out_flat.reshape(b, c, h, w)


def bfm_reference(x, conv_w, gamma, beta):
    """Pure-JAX reference mirroring the PyTorch forward."""
    b, c, h, w = x.shape

    def conv_gn_sig(v):  # v: (b, c, L)
        L = v.shape[-1]
        vp = jnp.pad(v, ((0, 0), (0, 0), (PAD, PAD)))
        out = sum(conv_w[None, :, k:k + 1] * vp[:, :, k:k + L]
                  for k in range(KSIZE))
        g = out.reshape(b, GROUPS, c // GROUPS, L)
        m = g.mean(axis=(2, 3), keepdims=True)
        var = g.var(axis=(2, 3), keepdims=True)
        g = (g - m) / jnp.sqrt(var + EPS)
        out = g.reshape(b, c, L) * gamma[None, :, None] + beta[None, :, None]
        return jax.nn.sigmoid(out)

    a_h = conv_gn_sig(x.mean(axis=3))[..., None]        # (b, c, h, 1)
    a_w = conv_gn_sig(x.mean(axis=2))[:, :, None, :]    # (b, c, 1, w)
    return x * a_h * a_w


if __name__ == "__main__":
    key = jax.random.PRNGKey(0)
    kx, kw, kg, kb = jax.random.split(key, 4)

    B, C, H, W = 2, 32, 16, 16      # C must be a multiple of 16 for GroupNorm(16, C)
    x = jax.random.normal(kx, (B, C, H, W), dtype=jnp.float32)

    conv_w = 0.2 * jax.random.normal(kw, (C, KSIZE), dtype=jnp.float32)
    gamma = 1.0 + 0.1 * jax.random.normal(kg, (C,), dtype=jnp.float32)
    beta = 0.1 * jax.random.normal(kb, (C,), dtype=jnp.float32)

    out = bfm_forward(x, conv_w, gamma, beta)
    jax.block_until_ready(out)

    ref = bfm_reference(x, conv_w, gamma, beta)
    np.testing.assert_allclose(np.asarray(out), np.asarray(ref),
                               rtol=2e-3, atol=2e-3)

    print("KERNEL_OK")
</pallas_src>

<mosaic_0001>
module attributes {stable_mosaic.version = 11 : i64} {
  func.func @bfm_kernel(%arg0: i32, %arg1: memref<64x256xf32, #tpu.memory_space<vmem>>, %arg2: memref<256x32xbf16, #tpu.memory_space<vmem>>, %arg3: memref<1x32xf32, #tpu.memory_space<vmem>>, %arg4: memref<32x224xbf16, #tpu.memory_space<vmem>>, %arg5: memref<64x224xf32, #tpu.memory_space<vmem>>, %arg6: memref<224x32xbf16, #tpu.memory_space<vmem>>, %arg7: memref<32x4xf32, #tpu.memory_space<vmem>>, %arg8: memref<32x4xf32, #tpu.memory_space<vmem>>, %arg9: memref<64x64xbf16, #tpu.memory_space<vmem>>, %arg10: memref<64x2xf32, #tpu.memory_space<vmem>>, %arg11: memref<32x512xbf16, #tpu.memory_space<vmem>>, %arg12: memref<64x256xf32, #tpu.memory_space<vmem>>) attributes {dimension_semantics = [#tpu.dimension_semantics<arbitrary>], iteration_bounds = array<i64: 1>, scalar_prefetch = 0 : i64, scratch_operands = 0 : i64, tpu.core_type = #tpu.core_type<tc>, window_params = [{pipeline_mode = #tpu.pipeline_mode<synchronous>, transform_indices = @transform_0, window_bounds = array<i64: 64, 256>}, {pipeline_mode = #tpu.pipeline_mode<synchronous>, transform_indices = @transform_1, window_bounds = array<i64: 256, 32>}, {pipeline_mode = #tpu.pipeline_mode<synchronous>, transform_indices = @transform_2, window_bounds = array<i64: 1, 32>}, {pipeline_mode = #tpu.pipeline_mode<synchronous>, transform_indices = @transform_3, window_bounds = array<i64: 32, 224>}, {pipeline_mode = #tpu.pipeline_mode<synchronous>, transform_indices = @transform_4, window_bounds = array<i64: 64, 224>}, {pipeline_mode = #tpu.pipeline_mode<synchronous>, transform_indices = @transform_5, window_bounds = array<i64: 224, 32>}, {pipeline_mode = #tpu.pipeline_mode<synchronous>, transform_indices = @transform_6, window_bounds = array<i64: 32, 4>}, {pipeline_mode = #tpu.pipeline_mode<synchronous>, transform_indices = @transform_7, window_bounds = array<i64: 32, 4>}, {pipeline_mode = #tpu.pipeline_mode<synchronous>, transform_indices = @transform_8, window_bounds = array<i64: 64, 64>}, {pipeline_mode = #tpu.pipeline_mode<synchronous>, transform_indices = @transform_9, window_bounds = array<i64: 64, 2>}, {pipeline_mode = #tpu.pipeline_mode<synchronous>, transform_indices = @transform_10, window_bounds = array<i64: 32, 512>}, {pipeline_mode = #tpu.pipeline_mode<synchronous>, transform_indices = @transform_11, window_bounds = array<i64: 64, 256>}]} {
    %c0 = arith.constant 0 : index
    %c0_0 = arith.constant 0 : index
    %0 = vector.load %arg1[%c0, %c0_0] : memref<64x256xf32, #tpu.memory_space<vmem>>, vector<64x256xf32>
    %c0_1 = arith.constant 0 : index
    %c0_2 = arith.constant 0 : index
    %1 = vector.load %arg2[%c0_1, %c0_2] : memref<256x32xbf16, #tpu.memory_space<vmem>>, vector<256x32xbf16>
    %2 = arith.extf %1 : vector<256x32xbf16> to vector<256x32xf32>
    %cst = arith.constant dense<0.000000e+00> : vector<64x32xf32>
    %3 = tpu.matmul %0, %2, %cst {dimension_numbers = #tpu.dot_dimension_numbers<[1], [0], [0], [1], [0, 0, 1, 1], [], []>} : vector<64x256xf32>, vector<256x32xf32>, vector<64x32xf32> -> vector<64x32xf32>
    %c0_3 = arith.constant 0 : index
    %c0_4 = arith.constant 0 : index
    %4 = vector.load %arg3[%c0_3, %c0_4] : memref<1x32xf32, #tpu.memory_space<vmem>>, vector<1x32xf32>
    %5 = vector.broadcast %4 : vector<1x32xf32> to vector<64x32xf32>
    %6 = arith.mulf %3, %5 : vector<64x32xf32>
    %c0_5 = arith.constant 0 : index
    %c0_6 = arith.constant 0 : index
    %7 = vector.load %arg4[%c0_5, %c0_6] : memref<32x224xbf16, #tpu.memory_space<vmem>>, vector<32x224xbf16>
    %8 = arith.extf %7 : vector<32x224xbf16> to vector<32x224xf32>
    %cst_7 = arith.constant dense<0.000000e+00> : vector<64x224xf32>
    %9 = tpu.matmul %6, %8, %cst_7 {dimension_numbers = #tpu.dot_dimension_numbers<[1], [0], [0], [1], [0, 0, 1, 1], [], []>} : vector<64x32xf32>, vector<32x224xf32>, vector<64x224xf32> -> vector<64x224xf32>
    %c0_8 = arith.constant 0 : index
    %c0_9 = arith.constant 0 : index
    %10 = vector.load %arg5[%c0_8, %c0_9] : memref<64x224xf32, #tpu.memory_space<vmem>>, vector<64x224xf32>
    %11 = arith.mulf %9, %10 : vector<64x224xf32>
    %c0_10 = arith.constant 0 : index
    %c0_11 = arith.constant 0 : index
    %12 = vector.load %arg6[%c0_10, %c0_11] : memref<224x32xbf16, #tpu.memory_space<vmem>>, vector<224x32xbf16>
    %13 = arith.extf %12 : vector<224x32xbf16> to vector<224x32xf32>
    %cst_12 = arith.constant dense<0.000000e+00> : vector<64x32xf32>
    %14 = tpu.matmul %11, %13, %cst_12 {dimension_numbers = #tpu.dot_dimension_numbers<[1], [0], [0], [1], [0, 0, 1, 1], [], []>} : vector<64x224xf32>, vector<224x32xf32>, vector<64x32xf32> -> vector<64x32xf32>
    %c0_13 = arith.constant 0 : index
    %c0_14 = arith.constant 0 : index
    %15 = vector.load %arg7[%c0_13, %c0_14] : memref<32x4xf32, #tpu.memory_space<vmem>>, vector<32x4xf32>
    %cst_15 = arith.constant dense<0.000000e+00> : vector<64x4xf32>
    %16 = tpu.matmul %14, %15, %cst_15 {dimension_numbers = #tpu.dot_dimension_numbers<[1], [0], [0], [1], [0, 0, 1, 1], [], []>} : vector<64x32xf32>, vector<32x4xf32>, vector<64x4xf32> -> vector<64x4xf32>
    %17 = arith.mulf %14, %14 : vector<64x32xf32>
    %c0_16 = arith.constant 0 : index
    %c0_17 = arith.constant 0 : index
    %18 = vector.load %arg8[%c0_16, %c0_17] : memref<32x4xf32, #tpu.memory_space<vmem>>, vector<32x4xf32>
    %cst_18 = arith.constant dense<0.000000e+00> : vector<64x4xf32>
    %19 = tpu.matmul %17, %18, %cst_18 {dimension_numbers = #tpu.dot_dimension_numbers<[1], [0], [0], [1], [0, 0, 1, 1], [], []>} : vector<64x32xf32>, vector<32x4xf32>, vector<64x4xf32> -> vector<64x4xf32>
    %c0_19 = arith.constant 0 : index
    %c0_20 = arith.constant 0 : index
    %20 = vector.load %arg9[%c0_19, %c0_20] : memref<64x64xbf16, #tpu.memory_space<vmem>>, vector<64x64xbf16>
    %21 = arith.extf %20 : vector<64x64xbf16> to vector<64x64xf32>
    %22 = arith.addf %16, %19 : vector<64x4xf32>
    %cst_21 = arith.constant dense<0.000000e+00> : vector<64x4xf32>
    %23 = tpu.matmul %21, %22, %cst_21 {dimension_numbers = #tpu.dot_dimension_numbers<[1], [0], [0], [1], [0, 0, 1, 1], [], []>} : vector<64x64xf32>, vector<64x4xf32>, vector<64x4xf32> -> vector<64x4xf32>
    %24 = vector.extract_strided_slice %23 {offsets = [0, 0], sizes = [64, 2], strides = [1, 1]} : vector<64x4xf32> to vector<64x2xf32>
    %25 = vector.extract_strided_slice %23 {offsets = [0, 2], sizes = [64, 2], strides = [1, 1]} : vector<64x4xf32> to vector<64x2xf32>
    %26 = arith.mulf %24, %24 : vector<64x2xf32>
    %27 = arith.subf %25, %26 : vector<64x2xf32>
    %cst_22 = arith.constant 0.000000e+00 : f32
    %28 = vector.broadcast %cst_22 : f32 to vector<64x2xf32>
    %29 = arith.maximumf %27, %28 : vector<64x2xf32>
    %cst_23 = arith.constant 9.99999974E-6 : f32
    %30 = vector.broadcast %cst_23 : f32 to vector<64x2xf32>
    %31 = arith.addf %29, %30 : vector<64x2xf32>
    %32 = math.rsqrt %31 : vector<64x2xf32>
    %c0_24 = arith.constant 0 : index
    %c0_25 = arith.constant 0 : index
    %33 = vector.load %arg10[%c0_24, %c0_25] : memref<64x2xf32, #tpu.memory_space<vmem>>, vector<64x2xf32>
    %34 = vector.extract_strided_slice %33 {offsets = [0, 0], sizes = [64, 1], strides = [1, 1]} : vector<64x2xf32> to vector<64x1xf32>
    %35 = vector.broadcast %34 : vector<64x1xf32> to vector<64x2xf32>
    %36 = arith.mulf %35, %32 : vector<64x2xf32>
    %37 = vector.extract_strided_slice %33 {offsets = [0, 1], sizes = [64, 1], strides = [1, 1]} : vector<64x2xf32> to vector<64x1xf32>
    %38 = arith.mulf %24, %36 : vector<64x2xf32>
    %39 = vector.broadcast %37 : vector<64x1xf32> to vector<64x2xf32>
    %40 = arith.subf %39, %38 : vector<64x2xf32>
    %41 = tpu.iota {dimensions = array<i32: 1>} : vector<1x32xi32>
    %c16_i32 = arith.constant 16 : i32
    %42 = vector.broadcast %c16_i32 : i32 to vector<1x32xi32>
    %43 = arith.cmpi slt, %41, %42 : vector<1x32xi32>
    %44 = vector.extract_strided_slice %36 {offsets = [0, 0], sizes = [64, 1], strides = [1, 1]} : vector<64x2xf32> to vector<64x1xf32>
    %45 = vector.extract_strided_slice %36 {offsets = [0, 1], sizes = [64, 1], strides = [1, 1]} : vector<64x2xf32> to vector<64x1xf32>
    %46 = vector.shape_cast %43 : vector<1x32xi1> to vector<1x32xi1>
    %47 = vector.broadcast %46 : vector<1x32xi1> to vector<64x32xi1>
    %48 = vector.shape_cast %44 : vector<64x1xf32> to vector<64x1xf32>
    %49 = vector.broadcast %48 : vector<64x1xf32> to vector<64x32xf32>
    %50 = vector.shape_cast %45 : vector<64x1xf32> to vector<64x1xf32>
    %51 = vector.broadcast %50 : vector<64x1xf32> to vector<64x32xf32>
    %52 = arith.select %47, %49, %51 : vector<64x32xi1>, vector<64x32xf32>
    %53 = vector.extract_strided_slice %40 {offsets = [0, 0], sizes = [64, 1], strides = [1, 1]} : vector<64x2xf32> to vector<64x1xf32>
    %54 = vector.extract_strided_slice %40 {offsets = [0, 1], sizes = [64, 1], strides = [1, 1]} : vector<64x2xf32> to vector<64x1xf32>
    %55 = vector.shape_cast %43 : vector<1x32xi1> to vector<1x32xi1>
    %56 = vector.broadcast %55 : vector<1x32xi1> to vector<64x32xi1>
    %57 = vector.shape_cast %53 : vector<64x1xf32> to vector<64x1xf32>
    %58 = vector.broadcast %57 : vector<64x1xf32> to vector<64x32xf32>
    %59 = vector.shape_cast %54 : vector<64x1xf32> to vector<64x1xf32>
    %60 = vector.broadcast %59 : vector<64x1xf32> to vector<64x32xf32>
    %61 = arith.select %56, %58, %60 : vector<64x32xi1>, vector<64x32xf32>
    %62 = arith.mulf %14, %52 : vector<64x32xf32>
    %63 = arith.addf %62, %61 : vector<64x32xf32>
    %64 = arith.negf %63 : vector<64x32xf32>
    %65 = math.exp %64 : vector<64x32xf32>
    %cst_26 = arith.constant 1.000000e+00 : f32
    %66 = vector.broadcast %cst_26 : f32 to vector<64x32xf32>
    %67 = arith.addf %66, %65 : vector<64x32xf32>
    %68 = arith.divf %66, %67 : vector<64x32xf32>
    %c0_27 = arith.constant 0 : index
    %c0_28 = arith.constant 0 : index
    %69 = vector.load %arg11[%c0_27, %c0_28] : memref<32x512xbf16, #tpu.memory_space<vmem>>, vector<32x512xbf16>
    %70 = arith.extf %69 : vector<32x512xbf16> to vector<32x512xf32>
    %cst_29 = arith.constant dense<0.000000e+00> : vector<64x512xf32>
    %71 = tpu.matmul %68, %70, %cst_29 {dimension_numbers = #tpu.dot_dimension_numbers<[1], [0], [0], [1], [0, 0, 1, 1], [], []>} : vector<64x32xf32>, vector<32x512xf32>, vector<64x512xf32> -> vector<64x512xf32>
    %72 = vector.extract_strided_slice %71 {offsets = [0, 0], sizes = [64, 256], strides = [1, 1]} : vector<64x512xf32> to vector<64x256xf32>
    %73 = arith.mulf %0, %72 : vector<64x256xf32>
    %74 = vector.extract_strided_slice %71 {offsets = [0, 256], sizes = [64, 256], strides = [1, 1]} : vector<64x512xf32> to vector<64x256xf32>
    %75 = arith.mulf %73, %74 : vector<64x256xf32>
    %c0_30 = arith.constant 0 : index
    %c0_31 = arith.constant 0 : index
    %76 = vector.load %arg12[%c0_30, %c0_31] : memref<64x256xf32, #tpu.memory_space<vmem>>, vector<64x256xf32>
    tpu.vector_store %arg12[%c0_30, %c0_31], %75 {strides = array<i32>} : memref<64x256xf32, #tpu.memory_space<vmem>>, vector<64x256xf32>,
    return
  }
  func.func @transform_0(%arg0: i32) -> (i32, i32) {
    %c0_i32 = arith.constant 0 : i32
    %c0_i32_0 = arith.constant 0 : i32
    %c0_i32_1 = arith.constant 0 : i32
    return %c0_i32, %c0_i32_0 : i32, i32
  }
  func.func @transform_1(%arg0: i32) -> (i32, i32) {
    %c0_i32 = arith.constant 0 : i32
    %c0_i32_0 = arith.constant 0 : i32
    %c0_i32_1 = arith.constant 0 : i32
    return %c0_i32, %c0_i32_0 : i32, i32
  }
  func.func @transform_2(%arg0: i32) -> (i32, i32) {
    %c0_i32 = arith.constant 0 : i32
    %c0_i32_0 = arith.constant 0 : i32
    %c0_i32_1 = arith.constant 0 : i32
    return %c0_i32, %c0_i32_0 : i32, i32
  }
  func.func @transform_3(%arg0: i32) -> (i32, i32) {
    %c0_i32 = arith.constant 0 : i32
    %c0_i32_0 = arith.constant 0 : i32
    %c0_i32_1 = arith.constant 0 : i32
    return %c0_i32, %c0_i32_0 : i32, i32
  }
  func.func @transform_4(%arg0: i32) -> (i32, i32) {
    %c0_i32 = arith.constant 0 : i32
    %c0_i32_0 = arith.constant 0 : i32
    %c0_i32_1 = arith.constant 0 : i32
    return %c0_i32, %c0_i32_0 : i32, i32
  }
  func.func @transform_5(%arg0: i32) -> (i32, i32) {
    %c0_i32 = arith.constant 0 : i32
    %c0_i32_0 = arith.constant 0 : i32
    %c0_i32_1 = arith.constant 0 : i32
    return %c0_i32, %c0_i32_0 : i32, i32
  }
  func.func @transform_6(%arg0: i32) -> (i32, i32) {
    %c0_i32 = arith.constant 0 : i32
    %c0_i32_0 = arith.constant 0 : i32
    %c0_i32_1 = arith.constant 0 : i32
    return %c0_i32, %c0_i32_0 : i32, i32
  }
  func.func @transform_7(%arg0: i32) -> (i32, i32) {
    %c0_i32 = arith.constant 0 : i32
    %c0_i32_0 = arith.constant 0 : i32
    %c0_i32_1 = arith.constant 0 : i32
    return %c0_i32, %c0_i32_0 : i32, i32
  }
  func.func @transform_8(%arg0: i32) -> (i32, i32) {
    %c0_i32 = arith.constant 0 : i32
    %c0_i32_0 = arith.constant 0 : i32
    %c0_i32_1 = arith.constant 0 : i32
    return %c0_i32, %c0_i32_0 : i32, i32
  }
  func.func @transform_9(%arg0: i32) -> (i32, i32) {
    %c0_i32 = arith.constant 0 : i32
    %c0_i32_0 = arith.constant 0 : i32
    %c0_i32_1 = arith.constant 0 : i32
    return %c0_i32, %c0_i32_0 : i32, i32
  }
  func.func @transform_10(%arg0: i32) -> (i32, i32) {
    %c0_i32 = arith.constant 0 : i32
    %c0_i32_0 = arith.constant 0 : i32
    %c0_i32_1 = arith.constant 0 : i32
    return %c0_i32, %c0_i32_0 : i32, i32
  }
  func.func @transform_11(%arg0: i32) -> (i32, i32) {
    %c0_i32 = arith.constant 0 : i32
    %c0_i32_0 = arith.constant 0 : i32
    %c0_i32_1 = arith.constant 0 : i32
    return %c0_i32, %c0_i32_0 : i32, i32
  }
}

</mosaic_0001>

<bundles_post_ra>
// kernel: tile.14
= control target key start
LH: loop header
LB: loop body
LE: loop exit
PB: predicated region body
PF: predicated region fallthrough
CT: control target
= control target key end

     0   :  { %vm32_vm0 = vcmask 1046532   ;;  %vm34_vm1 = vcmask 261120   ;;  %vm44_vm2 = vcmask 523520   ;;  %s91_s0 = inlined_call_operand.vmem [shape: f32[2,32,7], index: 0, kind: input, shape index: {}]   ;;  %s92_s1 = inlined_call_operand.vmem [shape: f32[64,7], index: 1, kind: output, shape index: {}]  }
   0x1   :  { %v46_v0 = vld [vmem:[%s91_s0 + $0xc] sm:$0x3]  ;;  %v47_v1 = vld [vmem:[%s91_s0 + $0xa] sm:$0x3]  ;;  %v48_v2 = vld [vmem:[%s91_s0 + $0x8] sm:$0x3] }
   0x2   :  { %7 = vst [vmem:[#allocation0 + $0x30] sm:$0x3] %v46_v0  ;;  %v49_v3 = vld [vmem:[%s91_s0 + $0x6] sm:$0x3]  ;;  %v50_v4 = vld [vmem:[%s91_s0 + $0x4] sm:$0x3] }
   0x3   :  { %11 = vst [vmem:[#allocation0 + $0x28] sm:$0x3] %v47_v1  ;;  %v51_v5 = vld [vmem:[%s91_s0 + $0x2] sm:$0x3]  ;;  %v28_v6 = vld [vmem:[%s91_s0] sm:$0x3] }
   0x4   :  { %15 = vst [vmem:[#allocation0 + $0x20] sm:$0x3] %v48_v2  ;;  %s53_s0 = smov 32  }
   0x5   :  { %19 = vst [vmem:[#allocation0 + $0x18] sm:$0x3] %v49_v3 }
   0x6   :  { %23 = vst [vmem:[#allocation0 + $0x10] sm:$0x3] %v50_v4 }
   0x7   :  { %27 = vst [vmem:[#allocation0 + $0x8] sm:$0x3] %v51_v5 }
   0x8   :  { %29 = vst [vmem:[#allocation0] sm:$0x3] %v28_v6 }
   0xb   :  { %v31_v7 = vld [vmem:[#allocation0] ss:$8 sm:$0x70]   ;;  %v39_v8 = vld [vmem:[#allocation0 + $0x1] ss:$8 sm:$0x70]  }
   0xf   :  { %v30_v9 = vld [vmem:[#allocation0] ss:$8 sm:$0xf]   ;;  %v37_v10 = vld [vmem:[#allocation0 + $0x1] ss:$8 sm:$0xf]  }
  0x10   :  { %v33_v11 = vsel %vm32_vm0, %v31_v7, %v30_v9  ;;  %v41_v12 = vsel %vm32_vm0, %v39_v8, %v37_v10 }
  0x11   :  { %42 = vrot.lane.b32.xlu0 %v41_v12, %s53_s0  ;;  %35 = vst.msk [vmem:[%s92_s1] sm:$0x7f] %vm34_vm1, %v33_v11  }
  0x83   :  { %v43_v13 = vpop.permute.xlu0 %42  }
  0x84   :  { %45 = vst.msk [vmem:[%s92_s1] sm:$0x7f] %vm44_vm2, %v43_v13  }

// kernel: bfm_forward.1
= control target key start
LH: loop header
LB: loop body
LE: loop exit
PB: predicated region body
PF: predicated region fallthrough
CT: control target
= control target key end

     0   :  { %vm224_vm0 = vcmask 261120   ;;  %vm419_vm1 = vcmask 785408   ;;  %vm688_vm2 = vcmask 523264   ;;  %s1991_s14 = smov 2   ;;  %s2779_s1 = inlined_call_operand.vmem [shape: bf16[256,32], index: 1, kind: input, shape index: {}]   ;;  %s2780_s0 = inlined_call_operand.vmem [shape: f32[64,256], index: 0, kind: input, shape index: {}]   ;;  %s2781_s2 = inlined_call_operand.vmem [shape: f32[1,32], index: 2, kind: input, shape index: {}]   ;;  %s2782_s3 = inlined_call_operand.vmem [shape: bf16[32,224], index: 3, kind: input, shape index: {}]   ;;  %s2783_s5 = inlined_call_operand.vmem [shape: bf16[224,32], index: 5, kind: input, shape index: {}]   ;;  %s2784_s4 = inlined_call_operand.vmem [shape: f32[64,224], index: 4, kind: input, shape index: {}]   ;;  %s2785_s7 = inlined_call_operand.vmem [shape: f32[32,4], index: 7, kind: input, shape index: {}]   ;;  %s2786_s6 = inlined_call_operand.vmem [shape: f32[32,4], index: 6, kind: input, shape index: {}]   ;;  %s2787_s8 = inlined_call_operand.vmem [shape: bf16[64,64], index: 8, kind: input, shape index: {}]   ;;  %s2788_s9 = inlined_call_operand.vmem [shape: f32[64,2], index: 9, kind: input, shape index: {}]   ;;  %s2789_s10 = inlined_call_operand.vmem [shape: bf16[32,512], index: 10, kind: input, shape index: {}]   ;;  %s2790_s11 = inlined_call_operand.vmem [shape: f32[64,256], index: 11, kind: output, shape index: {}]  }
   0x1   :  { %v1853_v0 = vld [vmem:[%s2779_s1 + $0x38] sm:$0xff]   ;;  %v1852_v2 = vld [vmem:[%s2779_s1 + $0x30] sm:$0xff]   ;;  %v1851_v10 = vld [vmem:[%s2779_s1 + $0x28] sm:$0xff]  }
   0x2   :  { %v1861_v1 = vld [vmem:[%s2779_s1 + $0x78] sm:$0xff]   ;;  %v1742_v3 = vunpack.c.h.bf16 %v1853_v0  ;;  %v1741_v5 = vunpack.c.l.bf16 %v1853_v0  ;;  %v1860_v7 = vld [vmem:[%s2779_s1 + $0x70] sm:$0xff]   ;;  %v1738_v8 = vunpack.c.h.bf16 %v1852_v2  ;;  %v1859_v11 = vld [vmem:[%s2779_s1 + $0x68] sm:$0xff]   ;;  %v1737_v12 = vunpack.c.l.bf16 %v1852_v2 }
   0x3   :  { %v1774_v4 = vunpack.c.h.bf16 %v1861_v1  ;;  %v1773_v6 = vunpack.c.l.bf16 %v1861_v1  ;;  %v1770_v9 = vunpack.c.h.bf16 %v1860_v7  ;;  %v1769_v13 = vunpack.c.l.bf16 %v1860_v7  ;;  %v1850_v16 = vld [vmem:[%s2779_s1 + $0x20] sm:$0xff]   ;;  %v1849_v22 = vld [vmem:[%s2779_s1 + $0x18] sm:$0xff]   ;;  %v1848_v28 = vld [vmem:[%s2779_s1 + $0x10] sm:$0xff]  }
   0x4   :  { %118 = vmatpush.msra.mxu0 %v1742_v3  ;;  %v1734_v14 = vunpack.c.h.bf16 %v1851_v10  ;;  %v1766_v15 = vunpack.c.h.bf16 %v1859_v11  ;;  %v1858_v17 = vld [vmem:[%s2779_s1 + $0x60] sm:$0xff]   ;;  %v1733_v18 = vunpack.c.l.bf16 %v1851_v10  ;;  %v1765_v19 = vunpack.c.l.bf16 %v1859_v11  ;;  %v1857_v23 = vld [vmem:[%s2779_s1 + $0x58] sm:$0xff]   ;;  %v1856_v29 = vld [vmem:[%s2779_s1 + $0x50] sm:$0xff]  }
   0x5   :  { %159 = vmatpush.msra.mxu1 %v1774_v4  ;;  %v1730_v20 = vunpack.c.h.bf16 %v1850_v16  ;;  %v1762_v21 = vunpack.c.h.bf16 %v1858_v17  ;;  %v1729_v24 = vunpack.c.l.bf16 %v1850_v16  ;;  %v1761_v25 = vunpack.c.l.bf16 %v1858_v17  ;;  %v1847_v34 = vld [vmem:[%s2779_s1 + $0x8] sm:$0xff]   ;;  %v1712_v40 = vld [vmem:[%s2779_s1] sm:$0xff]   ;;  %v40_v50 = vld [vmem:[%s2780_s0 + $0x10] sm:$0xff] }
   0x6   :  { %119 = vmatpush.msra.mxu0 %v1741_v5  ;;  %v1726_v26 = vunpack.c.h.bf16 %v1849_v22  ;;  %v1758_v27 = vunpack.c.h.bf16 %v1857_v23  ;;  %v1725_v30 = vunpack.c.l.bf16 %v1849_v22  ;;  %v1757_v31 = vunpack.c.l.bf16 %v1857_v23  ;;  %v1855_v35 = vld [vmem:[%s2779_s1 + $0x48] sm:$0xff]   ;;  %v1854_v41 = vld [vmem:[%s2779_s1 + $0x40] sm:$0xff]   ;;  %v41_v51 = vld [vmem:[%s2780_s0 + $0x18] sm:$0xff] }
   0x7   :  { %160 = vmatpush.msra.mxu1 %v1773_v6  ;;  %v1722_v32 = vunpack.c.h.bf16 %v1848_v28  ;;  %v1754_v33 = vunpack.c.h.bf16 %v1856_v29  ;;  %v1721_v36 = vunpack.c.l.bf16 %v1848_v28  ;;  %v1753_v37 = vunpack.c.l.bf16 %v1856_v29  ;;  %v38_v48 = vld [vmem:[%s2780_s0] sm:$0xff]  ;;  %v39_v49 = vld [vmem:[%s2780_s0 + $0x8] sm:$0xff]  ;;  %v44_v54 = vld [vmem:[%s2780_s0 + $0x30] sm:$0xff] }
   0x8   :  { %120 = vmatpush.msra.mxu0 %v1738_v8  ;;  %v1718_v38 = vunpack.c.h.bf16 %v1847_v34  ;;  %v1750_v39 = vunpack.c.h.bf16 %v1855_v35  ;;  %v1717_v42 = vunpack.c.l.bf16 %v1847_v34  ;;  %v1749_v43 = vunpack.c.l.bf16 %v1855_v35  ;;  %v42_v52 = vld [vmem:[%s2780_s0 + $0x20] sm:$0xff]  ;;  %v43_v53 = vld [vmem:[%s2780_s0 + $0x28] sm:$0xff]  ;;  %v45_v55 = vld [vmem:[%s2780_s0 + $0x38] sm:$0xff] }
   0x9   :  { %161 = vmatpush.msra.mxu1 %v1770_v9  ;;  %v1714_v44 = vunpack.c.h.bf16 %v1712_v40  ;;  %v1746_v45 = vunpack.c.h.bf16 %v1854_v41  ;;  %v1713_v46 = vunpack.c.l.bf16 %v1712_v40  ;;  %v1745_v47 = vunpack.c.l.bf16 %v1854_v41  ;;  %v215_v56 = vld [vmem:[%s2782_s3 + $0x18] sm:$0xff]  ;;  %v46_v58 = vld [vmem:[%s2780_s0 + $0x40] sm:$0xff]  ;;  %v47_v59 = vld [vmem:[%s2780_s0 + $0x48] sm:$0xff] }
   0xa   :  { %121 = vmatpush.msra.mxu0 %v1737_v12  ;;  %v222_v57 = vunpack.c.l.bf16 %v215_v56  ;;  %v48_v60 = vld [vmem:[%s2780_s0 + $0x50] sm:$0xff]  ;;  %v49_v61 = vld [vmem:[%s2780_s0 + $0x58] sm:$0xff]  ;;  %v50_v62 = vld [vmem:[%s2780_s0 + $0x60] sm:$0xff] }
   0xb   :  { %162 = vmatpush.msra.mxu1 %v1769_v13  ;;  %v51_v63 = vld [vmem:[%s2780_s0 + $0x68] sm:$0xff]  ;;  %v52_v0 = vld [vmem:[%s2780_s0 + $0x70] sm:$0xff]  ;;  %v53_v1 = vld [vmem:[%s2780_s0 + $0x78] sm:$0xff] }
   0xc   :  { %122 = vmatpush.msra.mxu0 %v1734_v14  ;;  %261 = vmatpush.msra.mxu2 %v222_v57  ;;  %v214_v2 = vld [vmem:[%s2782_s3 + $0x10] sm:$0xff]  ;;  %v213_v4 = vld [vmem:[%s2782_s3 + $0x8] sm:$0xff]  ;;  %v212_v6 = vld [vmem:[%s2782_s3] sm:$0xff] }
   0xd   :  { %163 = vmatpush.msra.mxu1 %v1766_v15  ;;  %1878 = vmatpush.msra.mxu3 %v222_v57  ;;  %v220_v3 = vunpack.c.l.bf16 %v214_v2  ;;  %v218_v5 = vunpack.c.l.bf16 %v213_v4  ;;  %v216_v7 = vunpack.c.l.bf16 %v212_v6  ;;  %v1924_v8 = vld [vmem:[%s2781_s2] ss:$0 sm:$0xff] }
   0xe   :  { %123 = vmatpush.msra.mxu0 %v1733_v18 }
   0xf   :  { %164 = vmatpush.msra.mxu1 %v1765_v19  ;;  %262 = vmatpush.msra.mxu2 %v220_v3 }
  0x10   :  { %124 = vmatpush.msra.mxu0 %v1730_v20  ;;  %1879 = vmatpush.msra.mxu3 %v220_v3 }
  0x11   :  { %165 = vmatpush.msra.mxu1 %v1762_v21  ;;  %263 = vmatpush.msra.mxu2 %v218_v5 }
  0x12   :  { %125 = vmatpush.msra.mxu0 %v1729_v24  ;;  %1880 = vmatpush.msra.mxu3 %v218_v5  ;;  %v331_v5 = vld [vmem:[%s2784_s4] sm:$0xff] }
  0x13   :  { %166 = vmatpush.msra.mxu1 %v1761_v25  ;;  %264 = vmatpush.msra.mxu2 %v216_v7  ;;  %v223_v25 = vunpack.c.h.bf16 %v215_v56 }
  0x14   :  { %126 = vmatpush.msra.mxu0 %v1726_v26  ;;  %1881 = vmatpush.msra.mxu3 %v216_v7  ;;  %v221_v26 = vunpack.c.h.bf16 %v214_v2  ;;  %v1776_v2 = vld [vmem:[%s2783_s5] sm:$0xff]  }
  0x15   :  { %167 = vmatpush.msra.mxu1 %v1758_v27  ;;  %v219_v27 = vunpack.c.h.bf16 %v213_v4  ;;  %v1778_v3 = vunpack.c.h.bf16 %v1776_v2  ;;  %v1777_v4 = vunpack.c.l.bf16 %v1776_v2 }
  0x16   :  { %127 = vmatpush.msra.mxu0 %v1725_v30  ;;  %302 = vmatpush.msrb.mxu3 %v223_v25  ;;  %v217_v30 = vunpack.c.h.bf16 %v212_v6 }
  0x17   :  { %168 = vmatpush.msra.mxu1 %v1757_v31 }
  0x18   :  { %128 = vmatpush.msra.mxu0 %v1722_v32  ;;  %303 = vmatpush.msrb.mxu3 %v221_v26 }
  0x19   :  { %169 = vmatpush.msra.mxu1 %v1754_v33 }
  0x1a   :  { %129 = vmatpush.msra.mxu0 %v1721_v36  ;;  %304 = vmatpush.msrb.mxu3 %v219_v27 }
  0x1b   :  { %170 = vmatpush.msra.mxu1 %v1753_v37 }
  0x1c   :  { %130 = vmatpush.msra.mxu0 %v1718_v38  ;;  %305 = vmatpush.msrb.mxu3 %v217_v30 }
  0x1d   :  { %171 = vmatpush.msra.mxu1 %v1750_v39 }
  0x1e   :  { %131 = vmatpush.msra.mxu0 %v1717_v42 }
  0x1f   :  { %172 = vmatpush.msra.mxu1 %v1749_v43 }
  0x20   :  { %132 = vmatpush.msra.mxu0 %v1714_v44 }
  0x21   :  { %173 = vmatpush.msra.mxu1 %v1746_v45  ;;  %v1868_v45 = vld [vmem:[%s2783_s5 + $0x38] sm:$0xff]  }
  0x22   :  { %133 = vmatpush.msra.mxu0 %v1713_v46  ;;  %v1806_v46 = vunpack.c.h.bf16 %v1868_v45 }
  0x23   :  { %174 = vmatpush.msra.mxu1 %v1745_v47  ;;  %134 = vmatmul.f32.vlgmr.msra.gmra.mxu0 %v38_v48  ;;  %v1805_v47 = vunpack.c.l.bf16 %v1868_v45  ;;  %v1867_v48 = vld [vmem:[%s2783_s5 + $0x30] sm:$0xff]  }
  0x24   :  { %175 = vmatmul.f32.vlgmr.msra.gmra.mxu1 %v39_v49  ;;  %444 = vmatpush.msrb.mxu2 %v1806_v46  ;;  %v1866_v49 = vld [vmem:[%s2783_s5 + $0x28] sm:$0xff]  }
  0x26   :  { %445 = vmatpush.msrb.mxu2 %v1805_v47  ;;  %v332_v47 = vld [vmem:[%s2784_s4 + $0x8] sm:$0xff] }
  0x2b   :  { %137 = vmatmul.f32.gmra.mxu0 %v40_v50  ;;  %v1802_v50 = vunpack.c.h.bf16 %v1867_v48 }
  0x2c   :  { %178 = vmatmul.f32.gmra.mxu1 %v41_v51  ;;  %v1801_v51 = vunpack.c.l.bf16 %v1867_v48 }
  0x2d   :  { %446 = vmatpush.msrb.mxu2 %v1802_v50  ;;  %v334_v50 = vld [vmem:[%s2784_s4 + $0x18] sm:$0xff] }
  0x2f   :  { %447 = vmatpush.msrb.mxu2 %v1801_v51 }
  0x33   :  { %140 = vmatmul.f32.gmra.mxu0 %v42_v52  ;;  %v1798_v52 = vunpack.c.h.bf16 %v1866_v49 }
  0x34   :  { %181 = vmatmul.f32.gmra.mxu1 %v43_v53  ;;  %v1797_v53 = vunpack.c.l.bf16 %v1866_v49 }
  0x35   :  { %448 = vmatpush.msrb.mxu2 %v1798_v52 }
  0x37   :  { %449 = vmatpush.msrb.mxu2 %v1797_v53  ;;  %v336_v53 = vld [vmem:[%s2784_s4 + $0x28] sm:$0xff] }
  0x3b   :  { %143 = vmatmul.f32.gmra.mxu0 %v44_v54  ;;  %v1865_v54 = vld [vmem:[%s2783_s5 + $0x20] sm:$0xff]  }
  0x3c   :  { %184 = vmatmul.f32.gmra.mxu1 %v45_v55  ;;  %v1864_v55 = vld [vmem:[%s2783_s5 + $0x18] sm:$0xff]   ;;  %v1794_v56 = vunpack.c.h.bf16 %v1865_v54  ;;  %v1793_v57 = vunpack.c.l.bf16 %v1865_v54 }
  0x3e   :  { %450 = vmatpush.msrb.mxu2 %v1794_v56  ;;  %v338_v56 = vld [vmem:[%s2784_s4 + $0x38] sm:$0xff] }
  0x40   :  { %451 = vmatpush.msrb.mxu2 %v1793_v57 }
  0x43   :  { %146 = vmatmul.f32.gmra.mxu0 %v46_v58  ;;  %v1790_v58 = vunpack.c.h.bf16 %v1864_v55 }
  0x44   :  { %187 = vmatmul.f32.gmra.mxu1 %v47_v59  ;;  %v1789_v59 = vunpack.c.l.bf16 %v1864_v55 }
  0x45   :  { %452 = vmatpush.msrb.mxu2 %v1790_v58 }
  0x47   :  { %453 = vmatpush.msrb.mxu2 %v1789_v59  ;;  %v340_v59 = vld [vmem:[%s2784_s4 + $0x48] sm:$0xff] }
  0x4b   :  { %149 = vmatmul.f32.gmra.mxu0 %v48_v60  ;;  %v1863_v60 = vld [vmem:[%s2783_s5 + $0x10] sm:$0xff]  }
  0x4c   :  { %190 = vmatmul.f32.gmra.mxu1 %v49_v61  ;;  %v1862_v61 = vld [vmem:[%s2783_s5 + $0x8] sm:$0xff]  }
  0x53   :  { %152 = vmatmul.f32.gmra.mxu0 %v50_v62  ;;  %v1786_v62 = vunpack.c.h.bf16 %v1863_v60 }
  0x54   :  { %193 = vmatmul.f32.gmra.mxu1 %v51_v63  ;;  %v1785_v63 = vunpack.c.l.bf16 %v1863_v60 }
  0x55   :  { %454 = vmatpush.msrb.mxu2 %v1786_v62  ;;  %v342_v62 = vld [vmem:[%s2784_s4 + $0x58] sm:$0xff] }
  0x57   :  { %455 = vmatpush.msrb.mxu2 %v1785_v63 }
  0x5b   :  { %155 = vmatmul.f32.gmra.mxu0 %v52_v0  ;;  %v1782_v0 = vunpack.c.h.bf16 %v1862_v61 }
  0x5c   :  { %196 = vmatmul.f32.gmra.mxu1 %v53_v1  ;;  %v1781_v1 = vunpack.c.l.bf16 %v1862_v61 }
  0x5d   :  { %456 = vmatpush.msrb.mxu2 %v1782_v0 }
  0x5f   :  { %457 = vmatpush.msrb.mxu2 %v1781_v1  ;;  %v344_v1 = vld [vmem:[%s2784_s4 + $0x68] sm:$0xff] }
  0x61   :  { %458 = vmatpush.msrb.mxu2 %v1778_v3 }
  0x63   :  { %459 = vmatpush.msrb.mxu2 %v1777_v4  ;;  %v346_v4 = vld [vmem:[%s2784_s4 + $0x78] sm:$0xff] }
  0xa0   :  { %v135_v9 = vpop.f32.mrf.mxu0 }
  0xa1   :  { %v176_v10 = vpop.f32.mrf.mxu1 }
  0xa2   :  { %v177_v11 = vadd.f32 %v176_v10, %v135_v9 }
  0xa4   :  { %v204_v12 = vmul.f32 %v1924_v8, %v177_v11  ;;  %v1874_v11 = vld [vmem:[%s2783_s5 + $0x68] sm:$0xff]  }
  0xa6   :  { %1623 = vmatmul.msk.f32.vlgmr.msra.gmra.mxu2 %vm224_vm0, %v204_v12 }
  0xa8   :  { %v138_v13 = vpop.f32.mrf.mxu0 }
  0xa9   :  { %v179_v14 = vpop.f32.mrf.mxu1 }
  0xaa   :  { %v180_v15 = vadd.f32 %v179_v14, %v138_v13  ;;  %v1829_v13 = vunpack.c.l.bf16 %v1874_v11  ;;  %v1873_v14 = vld [vmem:[%s2783_s5 + $0x60] sm:$0xff]  }
  0xac   :  { %v205_v16 = vmul.f32 %v1924_v8, %v180_v15  ;;  %v335_v15 = vld [vmem:[%s2784_s4 + $0x20] sm:$0xff] }
  0xae   :  { %1624 = vmatmul.msk.f32.gmra.mxu2 %vm224_vm0, %v205_v16 }
  0xb0   :  { %v141_v17 = vpop.f32.mrf.mxu0 }
  0xb1   :  { %v182_v18 = vpop.f32.mrf.mxu1 }
  0xb2   :  { %v183_v19 = vadd.f32 %v182_v18, %v141_v17  ;;  %v1825_v18 = vunpack.c.l.bf16 %v1873_v14 }
  0xb4   :  { %v206_v20 = vmul.f32 %v1924_v8, %v183_v19 }
  0xb6   :  { %1625 = vmatmul.msk.f32.gmra.mxu2 %vm224_vm0, %v206_v20 }
  0xb8   :  { %v144_v21 = vpop.f32.mrf.mxu0 }
  0xb9   :  { %v185_v22 = vpop.f32.mrf.mxu1 }
  0xba   :  { %v186_v23 = vadd.f32 %v185_v22, %v144_v21 }
  0xbc   :  { %v207_v24 = vmul.f32 %v1924_v8, %v186_v23  ;;  %v1871_v23 = vld [vmem:[%s2783_s5 + $0x50] sm:$0xff]  }
  0xbd   :  { %v1818_v25 = vunpack.c.h.bf16 %v1871_v23  ;;  %v1817_v27 = vunpack.c.l.bf16 %v1871_v23 }
  0xbe   :  { %1626 = vmatmul.msk.f32.gmra.mxu2 %vm224_vm0, %v207_v24 }
  0xc0   :  { %v147_v28 = vpop.f32.mrf.mxu0 }
  0xc1   :  { %v188_v29 = vpop.f32.mrf.mxu1 }
  0xc2   :  { %v189_v31 = vadd.f32 %v188_v29, %v147_v28  ;;  %v1870_v29 = vld [vmem:[%s2783_s5 + $0x48] sm:$0xff]  }
  0xc3   :  { %v1814_v30 = vunpack.c.h.bf16 %v1870_v29 }
  0xc4   :  { %v208_v32 = vmul.f32 %v1924_v8, %v189_v31  ;;  %v1813_v31 = vunpack.c.l.bf16 %v1870_v29 }
  0xc6   :  { %1627 = vmatmul.msk.f32.vlgmr.msra.gmra.mxu3 %vm224_vm0, %v208_v32 }
  0xc8   :  { %v150_v33 = vpop.f32.mrf.mxu0 }
  0xc9   :  { %v191_v34 = vpop.f32.mrf.mxu1 }
  0xca   :  { %v192_v35 = vadd.f32 %v191_v34, %v150_v33  ;;  %v339_v33 = vld [vmem:[%s2784_s4 + $0x40] sm:$0xff] }
  0xcc   :  { %v209_v36 = vmul.f32 %v1924_v8, %v192_v35 }
  0xce   :  { %1628 = vmatmul.msk.f32.gmra.mxu3 %vm224_vm0, %v209_v36 }
  0xd0   :  { %v153_v37 = vpop.f32.mrf.mxu0 }
  0xd1   :  { %v194_v38 = vpop.f32.mrf.mxu1 }
  0xd2   :  { %v195_v39 = vadd.f32 %v194_v38, %v153_v37  ;;  %v341_v38 = vld [vmem:[%s2784_s4 + $0x50] sm:$0xff] }
  0xd4   :  { %v210_v40 = vmul.f32 %v1924_v8, %v195_v39 }
  0xd6   :  { %1629 = vmatmul.msk.f32.gmra.mxu3 %vm224_vm0, %v210_v40 }
  0xd8   :  { %v156_v41 = vpop.f32.mrf.mxu0 }
  0xd9   :  { %v197_v42 = vpop.f32.mrf.mxu1 }
  0xda   :  { %v198_v43 = vadd.f32 %v197_v42, %v156_v41  ;;  %v343_v41 = vld [vmem:[%s2784_s4 + $0x60] sm:$0xff] }
  0xdc   :  { %v211_v44 = vmul.f32 %v1924_v8, %v198_v43  ;;  %v333_v8 = vld [vmem:[%s2784_s4 + $0x10] sm:$0xff] }
  0xde   :  { %1630 = vmatmul.msk.f32.gmra.mxu3 %vm224_vm0, %v211_v44 }
  0xe6   :  { %1631 = vmatmul.msk.f32.vlgmr.msrb.gmra.mxu3 %vm224_vm0, %v204_v12  ;;  %v1830_v12 = vunpack.c.h.bf16 %v1874_v11  ;;  %v527_v11 = vld [vmem:[%s2786_s6 + $0x8] sm:$0xff] }
  0xe8   :  { %489 = vmatpush.msra.mxu3 %v1830_v12  ;;  %v539_v12 = vld [vmem:[%s2785_s7 + $0x8] sm:$0xff] }
  0xea   :  { %490 = vmatpush.msra.mxu3 %v1829_v13  ;;  %v526_v13 = vld [vmem:[%s2786_s6] sm:$0xff] }
  0xee   :  { %1632 = vmatmul.msk.f32.gmra.mxu3 %vm224_vm0, %v205_v16  ;;  %v1826_v16 = vunpack.c.h.bf16 %v1873_v14  ;;  %v538_v14 = vld [vmem:[%s2785_s7] sm:$0xff] }
  0xf0   :  { %491 = vmatpush.msra.mxu3 %v1826_v16 }
  0xf2   :  { %492 = vmatpush.msra.mxu3 %v1825_v18 }
  0xf6   :  { %1633 = vmatmul.msk.f32.gmra.mxu3 %vm224_vm0, %v206_v20  ;;  %v1872_v20 = vld [vmem:[%s2783_s5 + $0x58] sm:$0xff]  }
  0xf7   :  { %v1822_v21 = vunpack.c.h.bf16 %v1872_v20  ;;  %v1821_v22 = vunpack.c.l.bf16 %v1872_v20 }
  0xf9   :  { %493 = vmatpush.msra.mxu3 %v1822_v21 }
  0xfb   :  { %494 = vmatpush.msra.mxu3 %v1821_v22 }
  0xfd   :  { %495 = vmatpush.msra.mxu3 %v1818_v25 }
  0xfe   :  { %1634 = vmatmul.msk.f32.gmra.mxu3 %vm224_vm0, %v207_v24  ;;  %v337_v24 = vld [vmem:[%s2784_s4 + $0x30] sm:$0xff] }
  0xff   :  { %496 = vmatpush.msra.mxu3 %v1817_v27 }
 0x101   :  { %497 = vmatpush.msra.mxu3 %v1814_v30 }
 0x103   :  { %498 = vmatpush.msra.mxu3 %v1813_v31 }
 0x106   :  { %1635 = vmatmul.msk.f32.gmra.mxu3 %vm224_vm0, %v208_v32  ;;  %v1869_v32 = vld [vmem:[%s2783_s5 + $0x40] sm:$0xff]  }
 0x107   :  { %v1810_v34 = vunpack.c.h.bf16 %v1869_v32 }
 0x109   :  { %499 = vmatpush.msra.mxu3 %v1810_v34 }
 0x10e   :  { %1636 = vmatmul.msk.f32.gmra.mxu3 %vm224_vm0, %v209_v36  ;;  %v1809_v36 = vunpack.c.l.bf16 %v1869_v32 }
 0x110   :  { %500 = vmatpush.msra.mxu3 %v1809_v36 }
 0x116   :  { %1637 = vmatmul.msk.f32.gmra.mxu3 %vm224_vm0, %v210_v40 }
 0x11e   :  { %1638 = vmatmul.msk.f32.gmra.mxu3 %vm224_vm0, %v211_v44  ;;  %v345_v44 = vld [vmem:[%s2784_s4 + $0x70] sm:$0xff] }
 0x129   :  { %v266_v6 = vpop.f32.mrf.mxu2 }
 0x12a   :  { %v347_v7 = vmul.f32 %v331_v5, %v266_v6 }
 0x12c   :  { %460 = vmatmul.f32.vlgmr.msrb.gmra.mxu2 %v347_v7  ;;  %v541_v7 = vld [vmem:[%s2785_s7 + $0x18] sm:$0xff] }
 0x12d   :  { %578 = vmatpush.msrb.mxu0 %v541_v7 }
 0x131   :  { %v269_v9 = vpop.f32.mrf.mxu2 }
 0x132   :  { %v349_v10 = vmul.f32 %v333_v8, %v269_v9  ;;  %v529_v8 = vld [vmem:[%s2786_s6 + $0x18] sm:$0xff]  ;;  %v528_v9 = vld [vmem:[%s2786_s6 + $0x10] sm:$0xff] }
 0x133   :  { %659 = vmatpush.msrb.mxu1 %v529_v8 }
 0x134   :  { %463 = vmatmul.f32.gmra.mxu2 %v349_v10  ;;  %v540_v10 = vld [vmem:[%s2785_s7 + $0x10] sm:$0xff] }
 0x135   :  { %660 = vmatpush.msrb.mxu1 %v528_v9  ;;  %579 = vmatpush.msrb.mxu0 %v540_v10  ;;  %v1875_v10 = vld [vmem:[%s2787_s8 + $0x8] sm:$0xff]  }
 0x137   :  { %661 = vmatpush.msrb.mxu1 %v527_v11  ;;  %580 = vmatpush.msrb.mxu0 %v539_v12  ;;  %v1837_v11 = vunpack.c.l.bf16 %v1875_v10  ;;  %v1838_v12 = vunpack.c.h.bf16 %v1875_v10 }
 0x139   :  { %v272_v17 = vpop.f32.mrf.mxu2  ;;  %662 = vmatpush.msrb.mxu1 %v526_v13  ;;  %581 = vmatpush.msrb.mxu0 %v538_v14  ;;  %v902_v13 = vld [vmem:[%s2788_s9 + $0x20] sm:$0xff] }
 0x13a   :  { %v351_v19 = vmul.f32 %v335_v15, %v272_v17  ;;  %v898_v14 = vld [vmem:[%s2788_s9] sm:$0xff] }
 0x13c   :  { %466 = vmatmul.f32.gmra.mxu2 %v351_v19 }
 0x141   :  { %v275_v26 = vpop.f32.mrf.mxu2 }
 0x142   :  { %v353_v28 = vmul.f32 %v337_v24, %v275_v26 }
 0x144   :  { %469 = vmatmul.f32.gmra.mxu2 %v353_v28 }
 0x149   :  { %v278_v35 = vpop.f32.mrf.mxu3 }
 0x14a   :  { %v355_v37 = vmul.f32 %v339_v33, %v278_v35 }
 0x14c   :  { %472 = vmatmul.f32.gmra.mxu2 %v355_v37 }
 0x151   :  { %v281_v39 = vpop.f32.mrf.mxu3 }
 0x152   :  { %v357_v40 = vmul.f32 %v341_v38, %v281_v39 }
 0x154   :  { %475 = vmatmul.f32.gmra.mxu2 %v357_v40 }
 0x159   :  { %v284_v42 = vpop.f32.mrf.mxu3 }
 0x15a   :  { %v359_v43 = vmul.f32 %v343_v41, %v284_v42 }
 0x15c   :  { %478 = vmatmul.f32.gmra.mxu2 %v359_v43 }
 0x161   :  { %v287_v45 = vpop.f32.mrf.mxu3 }
 0x162   :  { %v361_v46 = vmul.f32 %v345_v44, %v287_v45 }
 0x164   :  { %481 = vmatmul.f32.gmra.mxu2 %v361_v46 }
 0x169   :  { %v307_v48 = vpop.f32.mrf.mxu3 }
 0x16a   :  { %v348_v49 = vmul.f32 %v332_v47, %v307_v48 }
 0x16c   :  { %1639 = vmatmul.msk.f32.vlgmr.msra.gmra.mxu3 %vm419_vm1, %v348_v49 }
 0x171   :  { %v310_v51 = vpop.f32.mrf.mxu3 }
 0x172   :  { %v350_v52 = vmul.f32 %v334_v50, %v310_v51 }
 0x174   :  { %1640 = vmatmul.msk.f32.gmra.mxu3 %vm419_vm1, %v350_v52 }
 0x179   :  { %v313_v54 = vpop.f32.mrf.mxu3 }
 0x17a   :  { %v352_v55 = vmul.f32 %v336_v53, %v313_v54 }
 0x17c   :  { %1641 = vmatmul.msk.f32.gmra.mxu3 %vm419_vm1, %v352_v55 }
 0x181   :  { %v316_v57 = vpop.f32.mrf.mxu3 }
 0x182   :  { %v354_v58 = vmul.f32 %v338_v56, %v316_v57 }
 0x184   :  { %1642 = vmatmul.msk.f32.gmra.mxu3 %vm419_vm1, %v354_v58 }
 0x189   :  { %v319_v60 = vpop.f32.mrf.mxu3 }
 0x18a   :  { %v356_v61 = vmul.f32 %v340_v59, %v319_v60 }
 0x18c   :  { %1643 = vmatmul.msk.f32.gmra.mxu3 %vm419_vm1, %v356_v61 }
 0x191   :  { %v322_v63 = vpop.f32.mrf.mxu3 }
 0x192   :  { %v358_v0 = vmul.f32 %v342_v62, %v322_v63 }
 0x194   :  { %1644 = vmatmul.msk.f32.gmra.mxu3 %vm419_vm1, %v358_v0 }
 0x199   :  { %v325_v2 = vpop.f32.mrf.mxu3 }
 0x19a   :  { %v360_v3 = vmul.f32 %v344_v1, %v325_v2 }
 0x19c   :  { %1645 = vmatmul.msk.f32.gmra.mxu3 %vm419_vm1, %v360_v3 }
 0x1a1   :  { %v328_v5 = vpop.f32.mrf.mxu3 }
 0x1a2   :  { %v362_v6 = vmul.f32 %v346_v4, %v328_v5 }
 0x1a4   :  { %1646 = vmatmul.msk.f32.gmra.mxu3 %vm419_vm1, %v362_v6  ;;  %v1832_v6 = vld [vmem:[%s2787_s8] sm:$0xff]  }
 0x1a5   :  { %v1833_v8 = vunpack.c.l.bf16 %v1832_v6  ;;  %v1834_v9 = vunpack.c.h.bf16 %v1832_v6 }
 0x1af   :  { %v461_v15 = vpop.f32.mrf.mxu2 }
 0x1b7   :  { %v464_v16 = vpop.f32.mrf.mxu2 }
 0x1bf   :  { %v467_v20 = vpop.f32.mrf.mxu2 }
 0x1c7   :  { %v470_v24 = vpop.f32.mrf.mxu2 }
 0x1cf   :  { %v473_v30 = vpop.f32.mrf.mxu2 }
 0x1d7   :  { %v476_v35 = vpop.f32.mrf.mxu2 }
 0x1df   :  { %v479_v39 = vpop.f32.mrf.mxu2 }
 0x1e7   :  { %v482_v43 = vpop.f32.mrf.mxu2 }
 0x1ef   :  { %v502_v17 = vpop.f32.mrf.mxu3 }
 0x1f0   :  { %v2304_v18 = vadd.f32 %v502_v17, %v461_v15  ;;  %v1876_v15 = vld [vmem:[%s2787_s8 + $0x10] sm:$0xff]  }
 0x1f1   :  { %v1841_v17 = vunpack.c.l.bf16 %v1876_v15 }
 0x1f2   :  { %v530_v19 = vmul.f32 %v2304_v18, %v2304_v18  ;;  %1655 = vmatmul.msk.f32.vlgmr.msrb.gmra.mxu1 %vm224_vm0, %v2304_v18 }
 0x1f4   :  { %1647 = vmatmul.msk.f32.vlgmr.msrb.gmra.mxu0 %vm224_vm0, %v530_v19  ;;  %v900_v19 = vld [vmem:[%s2788_s9 + $0x10] sm:$0xff] }
 0x1f7   :  { %v505_v21 = vpop.f32.mrf.mxu3 }
 0x1f8   :  { %v2311_v22 = vadd.f32 %v505_v21, %v464_v16  ;;  %v1989_v16 = vmov 0   ;;  %v1842_v21 = vunpack.c.h.bf16 %v1876_v15 }
 0x1f9   :  { %1890 = vset.pattern.permute.xlu1 %v1989_v16  ;;  %1888 = vset.pattern.permute.xlu2 %v1989_v16 }
 0x1fa   :  { %1656 = vmatmul.msk.f32.gmra.mxu1 %vm224_vm0, %v2311_v22  ;;  %v531_v23 = vmul.f32 %v2311_v22, %v2311_v22  ;;  %928 = vperm.xlu1 %1890, %v902_v13  }
 0x1fb   :  { %908 = vperm.xlu2 %1888, %v898_v14   ;;  %1889 = vset.pattern.permute.xlu0 %v1989_v16 }
 0x1fc   :  { %1648 = vmatmul.msk.f32.gmra.mxu0 %vm224_vm0, %v531_v23  ;;  %v1877_v23 = vld [vmem:[%s2787_s8 + $0x18] sm:$0xff]  }
 0x1ff   :  { %v508_v25 = vpop.f32.mrf.mxu3 }
 0x200   :  { %v2318_v26 = vadd.f32 %v508_v25, %v467_v20  ;;  %v1990_v20 = vmov 1   ;;  %v1846_v25 = vunpack.c.h.bf16 %v1877_v23 }
 0x202   :  { %1657 = vmatmul.msk.f32.gmra.mxu1 %vm224_vm0, %v2318_v26  ;;  %v532_v27 = vmul.f32 %v2318_v26, %v2318_v26  ;;  %1891 = vset.pattern.permute.xlu1 %v1990_v20 }
 0x203   :  { %918 = vperm.xlu2 %1888, %v900_v19   ;;  %995 = vperm.xlu1 %1891, %v898_v14  }
 0x204   :  { %1649 = vmatmul.msk.f32.gmra.mxu0 %vm224_vm0, %v532_v27  ;;  %v899_v27 = vld [vmem:[%s2788_s9 + $0x8] sm:$0xff] }
 0x207   :  { %v511_v28 = vpop.f32.mrf.mxu3 }
 0x208   :  { %v2325_v29 = vadd.f32 %v511_v28, %v470_v24  ;;  %v1845_v24 = vunpack.c.l.bf16 %v1877_v23  ;;  %v2399_v28 = vld [vmem:[%s2788_s9 + $0x18] sm:$0xff] }
 0x20a   :  { %1658 = vmatmul.msk.f32.gmra.mxu1 %vm224_vm0, %v2325_v29  ;;  %v533_v31 = vmul.f32 %v2325_v29, %v2325_v29 }
 0x20b   :  { %999 = vperm.xlu1 %1891, %v899_v27   ;;  %923 = vperm.xlu2 %1888, %v2399_v28  }
 0x20c   :  { %1650 = vmatmul.msk.f32.gmra.mxu0 %vm224_vm0, %v533_v31  ;;  %v2408_v31 = vld [vmem:[%s2788_s9 + $0x30] sm:$0xff] }
 0x20f   :  { %v514_v32 = vpop.f32.mrf.mxu3 }
 0x210   :  { %v2332_v33 = vadd.f32 %v514_v32, %v473_v30  ;;  %v903_v30 = vld [vmem:[%s2788_s9 + $0x28] sm:$0xff]  ;;  %v2414_v32 = vld [vmem:[%s2788_s9 + $0x38] sm:$0xff]  ;;  %s1994_s9 = smov 126  }
 0x212   :  { %1659 = vmatmul.msk.f32.gmra.mxu1 %vm224_vm0, %v2332_v33  ;;  %v534_v34 = vmul.f32 %v2332_v33, %v2332_v33 }
 0x213   :  { %1003 = vperm.xlu1 %1891, %v900_v19   ;;  %933 = vperm.xlu2 %1888, %v903_v30  }
 0x214   :  { %1651 = vmatmul.msk.f32.gmra.mxu0 %vm224_vm0, %v534_v34 }
 0x217   :  { %v517_v36 = vpop.f32.mrf.mxu3 }
 0x218   :  { %v2339_v37 = vadd.f32 %v517_v36, %v476_v35 }
 0x21a   :  { %1660 = vmatmul.msk.f32.gmra.mxu1 %vm224_vm0, %v2339_v37  ;;  %v535_v38 = vmul.f32 %v2339_v37, %v2339_v37 }
 0x21b   :  { %938 = vperm.xlu2 %1888, %v2408_v31  }
 0x21c   :  { %1652 = vmatmul.msk.f32.gmra.mxu0 %vm224_vm0, %v535_v38 }
 0x21f   :  { %v520_v40 = vpop.f32.mrf.mxu3 }
 0x220   :  { %v2346_v41 = vadd.f32 %v520_v40, %v479_v39 }
 0x222   :  { %1661 = vmatmul.msk.f32.gmra.mxu1 %vm224_vm0, %v2346_v41  ;;  %v536_v42 = vmul.f32 %v2346_v41, %v2346_v41 }
 0x223   :  { %943 = vperm.xlu2 %1888, %v2414_v32  }
 0x224   :  { %1653 = vmatmul.msk.f32.gmra.mxu0 %vm224_vm0, %v536_v42 }
 0x227   :  { %v523_v44 = vpop.f32.mrf.mxu3 }
 0x228   :  { %v2353_v45 = vadd.f32 %v523_v44, %v482_v43 }
 0x22a   :  { %1662 = vmatmul.msk.f32.gmra.mxu1 %vm224_vm0, %v2353_v45  ;;  %v537_v46 = vmul.f32 %v2353_v45, %v2353_v45 }
 0x22b   :  { %1892 = vset.pattern.permute.xlu2 %v1990_v20 }
 0x22c   :  { %1654 = vmatmul.msk.f32.gmra.mxu0 %vm224_vm0, %v537_v46 }
 0x26f   :  { %v664_v47 = vpop.f32.mrf.mxu1 }
 0x271   :  { %v583_v48 = vpop.f32.mrf.mxu0 }
 0x272   :  { %v665_v49 = vadd.f32 %v664_v47, %v583_v48 }
 0x277   :  { %v667_v50 = vpop.f32.mrf.mxu1 }
 0x279   :  { %v586_v51 = vpop.f32.mrf.mxu0 }
 0x27a   :  { %v668_v7 = vadd.f32 %v667_v50, %v586_v51 }
 0x27f   :  { %v670_v52 = vpop.f32.mrf.mxu1 }
 0x281   :  { %v589_v53 = vpop.f32.mrf.mxu0 }
 0x282   :  { %v671_v5 = vadd.f32 %v670_v52, %v589_v53  ;;  %v909_v53 = vpop.permute.xlu2 %908 }
 0x287   :  { %v673_v54 = vpop.f32.mrf.mxu1 }
 0x289   :  { %v592_v55 = vpop.f32.mrf.mxu0 }
 0x28a   :  { %v674_v4 = vadd.f32 %v673_v54, %v592_v55  ;;  %v2450_v54 = vpop.permute.xlu2 %918 }
 0x28f   :  { %v676_v56 = vpop.f32.mrf.mxu1 }
 0x291   :  { %v595_v57 = vpop.f32.mrf.mxu0 }
 0x292   :  { %v677_v3 = vadd.f32 %v676_v56, %v595_v57  ;;  %v2452_v55 = vpop.permute.xlu2 %923  ;;  %v2454_v56 = vpop.permute.xlu1 %928 }
 0x297   :  { %v679_v58 = vpop.f32.mrf.mxu1 }
 0x299   :  { %v598_v59 = vpop.f32.mrf.mxu0 }
 0x29a   :  { %v680_v2 = vadd.f32 %v679_v58, %v598_v59  ;;  %v2456_v57 = vpop.permute.xlu2 %933  ;;  %v2458_v58 = vpop.permute.xlu1 %995 }
 0x29f   :  { %v682_v60 = vpop.f32.mrf.mxu1 }
 0x2a1   :  { %v601_v61 = vpop.f32.mrf.mxu0 }
 0x2a2   :  { %v683_v1 = vadd.f32 %v682_v60, %v601_v61  ;;  %v2460_v59 = vpop.permute.xlu2 %938  ;;  %v1992_v60 = vmov 2   ;;  %v2463_v61 = vpop.permute.xlu1 %999 }
 0x2a7   :  { %v685_v62 = vpop.f32.mrf.mxu1 }
 0x2a9   :  { %v604_v63 = vpop.f32.mrf.mxu0 }
 0x2aa   :  { %v686_v0 = vadd.f32 %v685_v62, %v604_v63 }
 0x2ac   :  { %721 = vmatpush.msra.mxu2 %v686_v0 }
 0x2ae   :  { %722 = vmatpush.msra.mxu2 %v683_v1  ;;  %v1993_v1 = vmov 3  }
 0x2b0   :  { %723 = vmatpush.msra.mxu2 %v680_v2  ;;  %v2468_v2 = vpop.permute.xlu2 %943 }
 0x2b2   :  { %724 = vmatpush.msra.mxu2 %v677_v3 }
 0x2b4   :  { %725 = vmatpush.msra.mxu2 %v674_v4  ;;  %v2470_v4 = vpop.permute.xlu1 %1003 }
 0x2b6   :  { %726 = vmatpush.msra.mxu2 %v671_v5 }
 0x2b8   :  { %727 = vmatpush.msra.mxu2 %v668_v7 }
 0x2ba   :  { %728 = vmatpush.msra.mxu2 %v665_v49 }
 0x2bb   :  { %1663 = vmatmul.msk.f32.vlgmr.msra.gmra.mxu2 %vm688_vm2, %v1833_v8 }
 0x2c3   :  { %1664 = vmatmul.msk.f32.gmra.mxu2 %vm688_vm2, %v1834_v9 }
 0x2cb   :  { %1665 = vmatmul.msk.f32.gmra.mxu2 %vm688_vm2, %v1837_v11 }
 0x2d3   :  { %1666 = vmatmul.msk.f32.gmra.mxu2 %vm688_vm2, %v1838_v12 }
 0x2db   :  { %1667 = vmatmul.msk.f32.gmra.mxu2 %vm688_vm2, %v1841_v17 }
 0x2e3   :  { %1668 = vmatmul.msk.f32.gmra.mxu2 %vm688_vm2, %v1842_v21 }
 0x2eb   :  { %1669 = vmatmul.msk.f32.gmra.mxu2 %vm688_vm2, %v1845_v24 }
 0x2f3   :  { %1670 = vmatmul.msk.f32.gmra.mxu2 %vm688_vm2, %v1846_v25 }
 0x33e   :  { %v2418_v34 = vpop.f32.mrf.mxu2 }
 0x33f   :  { %v754_v35 = vmul.f32 %v2418_v34, %v2418_v34 }
 0x341   :  { %770 = vrot.lane.b32.xlu0 %v754_v35, %s1991_s14 }
 0x346   :  { %v2422_v36 = vpop.f32.mrf.mxu2 }
 0x347   :  { %v755_v38 = vmul.f32 %v2422_v36, %v2422_v36 }
 0x349   :  { %772 = vrot.lane.b32.xlu0 %v755_v38, %s1991_s14 }
 0x34e   :  { %v2426_v39 = vpop.f32.mrf.mxu2 }
 0x34f   :  { %v756_v40 = vmul.f32 %v2426_v39, %v2426_v39 }
 0x351   :  { %774 = vrot.lane.b32.xlu1 %v756_v40, %s1991_s14  ;;  %913 = vperm.xlu0 %1889, %v899_v27  }
 0x356   :  { %v2430_v42 = vpop.f32.mrf.mxu2 }
 0x357   :  { %v757_v43 = vmul.f32 %v2430_v42, %v2430_v42 }
 0x359   :  { %776 = vrot.lane.b32.xlu1 %v757_v43, %s1991_s14  ;;  %1894 = vset.pattern.permute.xlu0 %v1993_v1 }
 0x35e   :  { %v2434_v44 = vpop.f32.mrf.mxu2 }
 0x35f   :  { %v758_v46 = vmul.f32 %v2434_v44, %v2434_v44 }
 0x361   :  { %1015 = vperm.xlu1 %1891, %v903_v30   ;;  %778 = vrot.lane.b32.xlu2 %v758_v46, %s1991_s14 }
 0x366   :  { %v2438_v47 = vpop.f32.mrf.mxu2 }
 0x367   :  { %v759_v48 = vmul.f32 %v2438_v47, %v2438_v47 }
 0x369   :  { %780 = vrot.lane.b32.xlu1 %v759_v48, %s1991_s14  ;;  %1011 = vperm.xlu2 %1892, %v902_v13  }
 0x36a   :  { %1897 = vset.pattern.permute.xlu1 %v1993_v1 }
 0x36e   :  { %v2442_v49 = vpop.f32.mrf.mxu2 }
 0x36f   :  { %v760_v50 = vmul.f32 %v2442_v49, %v2442_v49 }
 0x371   :  { %782 = vrot.lane.b32.xlu1 %v760_v50, %s1991_s14  ;;  %1893 = vset.pattern.permute.xlu2 %v1992_v60 }
 0x376   :  { %v2446_v51 = vpop.f32.mrf.mxu2 }
 0x377   :  { %v761_v52 = vmul.f32 %v2446_v51, %v2446_v51 }
 0x379   :  { %784 = vrot.lane.b32.xlu0 %v761_v52, %s1991_s14 }
 0x3b3   :  { %v771_v62 = vpop.permute.xlu0 %770 }
 0x3b4   :  { %v794_v63 = vsub.f32 %v2418_v34, %v771_v62 }
 0x3b6   :  { %v802_v0 = vmax.f32 %v794_v63, 0.0 }
 0x3b8   :  { %v810_v3 = vadd.f32 1e-05, %v802_v0 }
 0x3ba   :  { %1925 = vrsqrt.f32 %v810_v3  ;;  %vm824_vm4 = vweird.f32 %v810_v3 }
 0x3bb   :  { %v773_v5 = vpop.permute.xlu0 %772  ;;  %v779_v8 = vpop.permute.xlu2 %778 }
 0x3bc   :  { %v795_v6 = vsub.f32 %v2422_v36, %v773_v5  ;;  %v798_v12 = vsub.f32 %v2434_v44, %v779_v8 }
 0x3be   :  { %v803_v7 = vmax.f32 %v795_v6, 0.0  ;;  %v806_v19 = vmax.f32 %v798_v12, 0.0 }
 0x3c0   :  { %v1926_v9 = vpop.eup %1925  ;;  %v811_v10 = vadd.f32 1e-05, %v803_v7  ;;  %v2475_v35 = vadd.f32 1e-05, %v806_v19 }
 0x3c1   :  { %v819_v11 = vmul.f32 %v1926_v9, %v810_v3  ;;  %vm825_vm3 = vweird.f32 %v1926_v9 }
 0x3c2   :  { %1927 = vrsqrt.f32 %v811_v10  ;;  %vm826_vm5 = vmor %vm824_vm4, %vm825_vm3  ;;  %vm834_vm7 = vweird.f32 %v811_v10  ;;  %vm864_vm1 = vweird.f32 %v2475_v35 }
 0x3c3   :  { %v820_v13 = vmul.f32 %v1926_v9, %v819_v11  ;;  %v775_v14 = vpop.permute.xlu1 %774  ;;  %v914_v6 = vpop.permute.xlu0 %913 }
 0x3c4   :  { %v796_v15 = vsub.f32 %v2426_v39, %v775_v14 }
 0x3c5   :  { %v821_v17 = vmul.f32 0.5, %v820_v13 }
 0x3c6   :  { %v804_v21 = vmax.f32 %v796_v15, 0.0 }
 0x3c7   :  { %v822_v23 = vsub.f32 1.5, %v821_v17 }
 0x3c8   :  { %v1928_v24 = vpop.eup %1927  ;;  %v812_v25 = vadd.f32 1e-05, %v804_v21 }
 0x3c9   :  { %v829_v27 = vmul.f32 %v1928_v24, %v811_v10  ;;  %v823_v30 = vmul.f32 %v1926_v9, %v822_v23  ;;  %vm835_vm6 = vweird.f32 %v1928_v24 }
 0x3ca   :  { %1929 = vrsqrt.f32 %v812_v25  ;;  %vm836_vm8 = vmor %vm834_vm7, %vm835_vm6  ;;  %vm844_vm10 = vweird.f32 %v812_v25 }
 0x3cb   :  { %v830_v38 = vmul.f32 %v1928_v24, %v829_v27  ;;  %v777_v40 = vpop.permute.xlu1 %776  ;;  %v827_v43 = vsel %vm826_vm5, %v1926_v9, %v823_v30  ;;  %1931 = vrsqrt.f32 %v2475_v35 }
 0x3cc   :  { %v797_v46 = vsub.f32 %v2430_v42, %v777_v40  ;;  %v946_v48 = vmul.f32 %v909_v53, %v827_v43 }
 0x3cd   :  { %v831_v50 = vmul.f32 0.5, %v830_v38 }
 0x3ce   :  { %v805_v52 = vmax.f32 %v797_v46, 0.0  ;;  %1040 = vperm.xlu2 %1893, %v946_v48   ;;  %962 = vrot.lane.b32.xlu0 %v946_v48, %s1994_s9 }
 0x3cf   :  { %v832_v62 = vsub.f32 1.5, %v831_v50 }
 0x3d0   :  { %v1930_v63 = vpop.eup %1929  ;;  %v813_v0 = vadd.f32 1e-05, %v805_v52 }
 0x3d1   :  { %v839_v3 = vmul.f32 %v1930_v63, %v812_v25  ;;  %v833_v5 = vmul.f32 %v1928_v24, %v832_v62  ;;  %v1932_v9 = vpop.eup %1931  ;;  %vm845_vm9 = vweird.f32 %v1930_v63 }
 0x3d2   :  { %1933 = vrsqrt.f32 %v813_v0  ;;  %v859_v13 = vmul.f32 %v1932_v9, %v2475_v35  ;;  %vm846_vm11 = vmor %vm844_vm10, %vm845_vm9  ;;  %vm854_vm13 = vweird.f32 %v813_v0  ;;  %vm865_vm15 = vweird.f32 %v1932_v9 }
 0x3d3   :  { %v840_v7 = vmul.f32 %v1930_v63, %v839_v3  ;;  %v837_v53 = vsel %vm836_vm8, %v1928_v24, %v833_v5  ;;  %v2480_v8 = vpop.permute.xlu1 %1015  ;;  %vm866_vm2 = vmor %vm864_vm1, %vm865_vm15 }
 0x3d4   :  { %v947_v11 = vmul.f32 %v914_v6, %v837_v53  ;;  %v860_v19 = vmul.f32 %v1932_v9, %v859_v13 }
 0x3d5   :  { %v841_v12 = vmul.f32 0.5, %v840_v7 }
 0x3d6   :  { %1898 = vset.pattern.permute.xlu2 %v1990_v20  ;;  %1076 = vperm.xlu1 %1897, %v947_v11   ;;  %v861_v43 = vmul.f32 0.5, %v860_v19 }
 0x3d7   :  { %v842_v14 = vsub.f32 1.5, %v841_v12  ;;  %1072 = vperm.xlu0 %1894, %v946_v48   ;;  %1019 = vperm.xlu2 %1898, %v2408_v31  }
 0x3d8   :  { %v1934_v10 = vpop.eup %1933 }
 0x3d9   :  { %v849_v15 = vmul.f32 %v1934_v10, %v813_v0  ;;  %v843_v17 = vmul.f32 %v1930_v63, %v842_v14  ;;  %vm855_vm12 = vweird.f32 %v1934_v10 }
 0x3da   :  { %vm856_vm14 = vmor %vm854_vm13, %vm855_vm12 }
 0x3db   :  { %v850_v21 = vmul.f32 %v1934_v10, %v849_v15  ;;  %v781_v23 = vpop.permute.xlu1 %780  ;;  %v847_v24 = vsel %vm846_vm11, %v1930_v63, %v843_v17 }
 0x3dc   :  { %v799_v27 = vsub.f32 %v2438_v47, %v781_v23  ;;  %v948_v30 = vmul.f32 %v2450_v54, %v847_v24  ;;  %v862_v54 = vsub.f32 1.5, %v861_v43 }
 0x3dd   :  { %v851_v38 = vmul.f32 0.5, %v850_v21 }
 0x3de   :  { %v807_v40 = vmax.f32 %v799_v27, 0.0  ;;  %1899 = vset.pattern.permute.xlu1 %v1992_v60  ;;  %v863_v3 = vmul.f32 %v1932_v9, %v862_v54  ;;  %v1012_v54 = vpop.permute.xlu2 %1011 }
 0x3df   :  { %v852_v46 = vsub.f32 1.5, %v851_v38  ;;  %964 = vrot.lane.b32.xlu0 %v947_v11, %s1994_s9  ;;  %1900 = vset.pattern.permute.xlu2 %v1993_v1 }
 0x3e0   :  { %v815_v31 = vadd.f32 1e-05, %v807_v40  ;;  %1048 = vperm.xlu1 %1899, %v948_v30   ;;  %1080 = vperm.xlu2 %1900, %v948_v30   ;;  %v867_v12 = vsel %vm866_vm2, %v1932_v9, %v863_v3 }
 0x3e1   :  { %1895 = vset.pattern.permute.xlu0 %v1992_v60  ;;  %v853_v25 = vmul.f32 %v1934_v10, %v852_v46  ;;  %v950_v14 = vmul.f32 %v2454_v56, %v867_v12 }
 0x3e2   :  { %1935 = vrsqrt.f32 %v815_v31  ;;  %vm874_vm4 = vweird.f32 %v815_v31 }
 0x3e3   :  { %v783_v48 = vpop.permute.xlu1 %782  ;;  %v857_v50 = vsel %vm856_vm14, %v1934_v10, %v853_v25 }
 0x3e4   :  { %v800_v52 = vsub.f32 %v2442_v49, %v783_v48  ;;  %v949_v62 = vmul.f32 %v2452_v55, %v857_v50  ;;  %v1034_v50 = vlaneseq }
 0x3e6   :  { %v808_v63 = vmax.f32 %v800_v52, 0.0 }
 0x3e7   :  { %1044 = vperm.xlu0 %1895, %v947_v11  }
 0x3e8   :  { %v1936_v5 = vpop.eup %1935  ;;  %v816_v6 = vadd.f32 1e-05, %v808_v63  ;;  %1052 = vperm.xlu1 %1899, %v949_v62   ;;  %968 = vrot.lane.b32.xlu2 %v949_v62, %s1994_s9  ;;  %v2525_v63 = vand.u32 127, %v1034_v50 }
 0x3e9   :  { %v869_v0 = vmul.f32 %v1936_v5, %v815_v31  ;;  %vm875_vm3 = vweird.f32 %v1936_v5 }
 0x3ea   :  { %1937 = vrsqrt.f32 %v816_v6  ;;  %vm876_vm5 = vmor %vm874_vm4, %vm875_vm3  ;;  %vm884_vm10 = vweird.f32 %v816_v6  ;;  %vm1036_vm12 = vcmp.lt.s32.totalorder %v2525_v63, 16 }
 0x3eb   :  { %v870_v7 = vmul.f32 %v1936_v5, %v869_v0  ;;  %v785_v53 = vpop.permute.xlu0 %784 }
 0x3ec   :  { %v801_v13 = vsub.f32 %v2446_v51, %v785_v53 }
 0x3ed   :  { %v871_v11 = vmul.f32 0.5, %v870_v7 }
 0x3ee   :  { %v809_v55 = vmax.f32 %v801_v13, 0.0 }
 0x3ef   :  { %966 = vrot.lane.b32.xlu0 %v948_v30, %s1994_s9  ;;  %v872_v9 = vsub.f32 1.5, %v871_v11 }
 0x3f0   :  { %v1938_v10 = vpop.eup %1937  ;;  %v817_v15 = vadd.f32 1e-05, %v809_v55  ;;  %970 = vrot.lane.b32.xlu1 %v950_v14, %s1994_s9  ;;  %1084 = vperm.xlu2 %1900, %v949_v62  }
 0x3f1   :  { %v879_v35 = vmul.f32 %v1938_v10, %v816_v6  ;;  %1896 = vset.pattern.permute.xlu0 %v1990_v20  ;;  %1902 = vset.pattern.permute.xlu1 %v1993_v1  ;;  %v873_v56 = vmul.f32 %v1936_v5, %v872_v9  ;;  %vm885_vm7 = vweird.f32 %v1938_v10 }
 0x3f2   :  { %1939 = vrsqrt.f32 %v817_v15  ;;  %vm894_vm8 = vweird.f32 %v817_v15  ;;  %vm886_vm11 = vmor %vm884_vm10, %vm885_vm7 }
 0x3f3   :  { %v880_v17 = vmul.f32 %v1938_v10, %v879_v35  ;;  %v877_v27 = vsel %vm876_vm5, %v1936_v5, %v873_v56 }
 0x3f4   :  { %v951_v40 = vmul.f32 %v2456_v57, %v877_v27 }
 0x3f5   :  { %v881_v21 = vmul.f32 0.5, %v880_v17 }
 0x3f7   :  { %1007 = vperm.xlu0 %1896, %v2399_v28   ;;  %v882_v30 = vsub.f32 1.5, %v881_v21 }
 0x3f8   :  { %v1940_v19 = vpop.eup %1939  ;;  %1088 = vperm.xlu1 %1902, %v950_v14   ;;  %1901 = vset.pattern.permute.xlu2 %v1992_v60 }
 0x3f9   :  { %v889_v23 = vmul.f32 %v1940_v19, %v817_v15  ;;  %1056 = vperm.xlu2 %1901, %v950_v14   ;;  %vm895_vm6 = vweird.f32 %v1940_v19  ;;  %v883_v46 = vmul.f32 %v1938_v10, %v882_v30 }
 0x3fa   :  { %vm896_vm9 = vmor %vm894_vm8, %vm895_vm6 }
 0x3fb   :  { %v890_v24 = vmul.f32 %v1940_v19, %v889_v23  ;;  %v887_v25 = vsel %vm886_vm11, %v1938_v10, %v883_v46 }
 0x3fd   :  { %v891_v38 = vmul.f32 0.5, %v890_v24 }
 0x3ff   :  { %v892_v43 = vsub.f32 1.5, %v891_v38  ;;  %1023 = vperm.xlu0 %1896, %v2414_v32   ;;  %v2514_v32 = vmul.f32 %v2460_v59, %v887_v25 }
 0x400   :  { %972 = vrot.lane.b32.xlu1 %v951_v40, %s1994_s9 }
 0x401   :  { %1904 = vset.pattern.permute.xlu2 %v1993_v1  ;;  %1903 = vset.pattern.permute.xlu1 %v1992_v60  ;;  %v893_v28 = vmul.f32 %v1940_v19, %v892_v43 }
 0x402   :  { %1092 = vperm.xlu2 %1904, %v951_v40  }
 0x403   :  { %v897_v31 = vsel %vm896_vm9, %v1940_v19, %v893_v28 }
 0x404   :  { %v2509_v57 = vmul.f32 %v2468_v2, %v897_v31 }
 0x407   :  { %976 = vrot.lane.b32.xlu0 %v2509_v57, %s1994_s9 }
 0x408   :  { %1060 = vperm.xlu1 %1903, %v951_v40   ;;  %1909 = vset.pattern.permute.xlu0 %v1989_v16 }
 0x40a   :  { %974 = vrot.lane.b32.xlu2 %v2514_v32, %s1994_s9 }
 0x40b   :  { %1905 = vset.pattern.permute.xlu2 %v1989_v16 }
 0x410   :  { %1906 = vset.pattern.permute.xlu1 %v1990_v20 }
 0x428   :  { %v1041_v2 = vpop.permute.xlu2 %1040 }
 0x431   :  { %v2521_v48 = vpop.permute.xlu2 %1019 }
 0x43a   :  { %v1081_v3 = vpop.permute.xlu2 %1080 }
 0x440   :  { %v963_v52 = vpop.permute.xlu0 %962 }
 0x441   :  { %v986_v62 = vmul.f32 %v963_v52, %v2418_v34  ;;  %v1361_v52 = vld [vmem:[%s2789_s10 + $0x10] sm:$0xff] }
 0x442   :  { %v969_v34 = vpop.permute.xlu2 %968 }
 0x443   :  { %v1026_v59 = vsub.f32 %v2458_v58, %v986_v62  ;;  %v1362_v62 = vld [vmem:[%s2789_s10 + $0x18] sm:$0xff] }
 0x445   :  { %1152 = vperm.xlu1 %1906, %v1026_v59   ;;  %1113 = vperm.xlu2 %1905, %v1026_v59   ;;  %v1371_v59 = vunpack.c.l.bf16 %v1361_v52 }
 0x448   :  { %v1077_v5 = vpop.permute.xlu1 %1076 }
 0x449   :  { %v1073_v6 = vpop.permute.xlu0 %1072 }
 0x44a   :  { %v2530_v0 = vsel %vm1036_vm12, %v1041_v2, %v1073_v6  ;;  %v1085_v14 = vpop.permute.xlu2 %1084  ;;  %v1374_v6 = vunpack.c.h.bf16 %v1362_v62 }
 0x44d   :  { %1907 = vset.pattern.permute.xlu1 %v1989_v16  ;;  %1908 = vset.pattern.permute.xlu2 %v1990_v20 }
 0x451   :  { %v965_v7 = vpop.permute.xlu0 %964 }
 0x452   :  { %v987_v58 = vmul.f32 %v965_v7, %v2422_v36  ;;  %v1049_v53 = vpop.permute.xlu1 %1048  ;;  %v1360_v7 = vld [vmem:[%s2789_s10 + $0x8] sm:$0xff] }
 0x453   :  { %v2537_v12 = vsel %vm1036_vm12, %v1049_v53, %v1081_v3  ;;  %v1057_v21 = vpop.permute.xlu2 %1056  ;;  %v1372_v3 = vunpack.c.h.bf16 %v1361_v52 }
 0x454   :  { %v1027_v13 = vsub.f32 %v2463_v61, %v987_v58  ;;  %v989_v61 = vmul.f32 %v969_v34, %v2430_v42  ;;  %v1359_v34 = vld [vmem:[%s2789_s10] sm:$0xff] }
 0x455   :  { %v1367_v58 = vunpack.c.l.bf16 %v1359_v34  ;;  %v1368_v53 = vunpack.c.h.bf16 %v1359_v34 }
 0x456   :  { %1156 = vperm.xlu2 %1908, %v1027_v13   ;;  %1118 = vperm.xlu1 %1907, %v1027_v13   ;;  %v1369_v13 = vunpack.c.l.bf16 %v1360_v7 }
 0x459   :  { %v1045_v55 = vpop.permute.xlu0 %1044 }
 0x45a   :  { %v2542_v11 = vsel %vm1036_vm12, %v1045_v55, %v1077_v5  ;;  %v1053_v10 = vpop.permute.xlu1 %1052  ;;  %v1373_v5 = vunpack.c.l.bf16 %v1362_v62  ;;  %v1370_v55 = vunpack.c.h.bf16 %v1360_v7 }
 0x45b   :  { %v2546_v15 = vsel %vm1036_vm12, %v1053_v10, %v1085_v14  ;;  %v1191_v14 = vmul.f32 %v2530_v0, %v2304_v18 }
 0x45c   :  { %v1093_v42 = vpop.permute.xlu2 %1092 }
 0x461   :  { %v967_v36 = vpop.permute.xlu0 %966 }
 0x462   :  { %v988_v35 = vmul.f32 %v967_v36, %v2426_v39  ;;  %v971_v9 = vpop.permute.xlu1 %970 }
 0x463   :  { %v990_v56 = vmul.f32 %v971_v9, %v2434_v44 }
 0x464   :  { %v1028_v17 = vsub.f32 %v2470_v4, %v988_v35  ;;  %v975_v28 = vpop.permute.xlu2 %974 }
 0x465   :  { %v1030_v30 = vsub.f32 %v1012_v54, %v990_v56 }
 0x466   :  { %1160 = vperm.xlu2 %1908, %v1028_v17   ;;  %1123 = vperm.xlu1 %1907, %v1028_v17  }
 0x469   :  { %v1008_v19 = vpop.permute.xlu0 %1007 }
 0x46a   :  { %v1029_v23 = vsub.f32 %v1008_v19, %v989_v61  ;;  %v1089_v24 = vpop.permute.xlu1 %1088  ;;  %v1192_v19 = vmul.f32 %v2542_v11, %v2311_v22 }
 0x46b   :  { %v2554_v27 = vsel %vm1036_vm12, %v1057_v21, %v1089_v24 }
 0x46c   :  { %1128 = vperm.xlu0 %1909, %v1029_v23  }
 0x46e   :  { %1911 = vset.pattern.permute.xlu2 %v1989_v16  ;;  %1910 = vset.pattern.permute.xlu1 %v1990_v20 }
 0x46f   :  { %1133 = vperm.xlu2 %1911, %v1030_v30   ;;  %1164 = vperm.xlu1 %1910, %v1029_v23  }
 0x471   :  { %v1024_v43 = vpop.permute.xlu0 %1023 }
 0x472   :  { %v973_v39 = vpop.permute.xlu1 %972 }
 0x473   :  { %v991_v4 = vmul.f32 %v973_v39, %v2438_v47  ;;  %v992_v47 = vmul.f32 %v975_v28, %v2442_v49  ;;  %v1365_v49 = vld [vmem:[%s2789_s10 + $0x30] sm:$0xff] }
 0x474   :  { %1912 = vset.pattern.permute.xlu0 %v1990_v20  ;;  %v1380_v25 = vunpack.c.h.bf16 %v1365_v49 }
 0x475   :  { %1168 = vperm.xlu0 %1912, %v1030_v30   ;;  %v1031_v40 = vsub.f32 %v2480_v8, %v991_v4 }
 0x476   :  { %1460 = vmatpush.msra.mxu0 %v1380_v25 }
 0x477   :  { %1915 = vset.pattern.permute.xlu2 %v1992_v60  ;;  %1914 = vset.pattern.permute.xlu1 %v1993_v1 }
 0x478   :  { %1068 = vperm.xlu2 %1915, %v2509_v57   ;;  %1096 = vperm.xlu1 %1914, %v2514_v32  }
 0x479   :  { %v977_v8 = vpop.permute.xlu0 %976 }
 0x47a   :  { %v1061_v44 = vpop.permute.xlu1 %1060  ;;  %v993_v46 = vmul.f32 %v977_v8, %v2446_v51 }
 0x47b   :  { %v2566_v38 = vsel %vm1036_vm12, %v1061_v44, %v1093_v42 }
 0x47c   :  { %v1033_v31 = vsub.f32 %v1024_v43, %v993_v46  ;;  %v1193_v46 = vmul.f32 %v2537_v12, %v2318_v26 }
 0x47d   :  { %1913 = vset.pattern.permute.xlu0 %v1992_v60  ;;  %v1032_v60 = vsub.f32 %v2521_v48, %v992_v47 }
 0x47e   :  { %1064 = vperm.xlu0 %1913, %v2514_v32  }
 0x480   :  { %1917 = vset.pattern.permute.xlu2 %v1990_v20  ;;  %1916 = vset.pattern.permute.xlu1 %v1989_v16 }
 0x481   :  { %1172 = vperm.xlu2 %1917, %v1031_v40   ;;  %1138 = vperm.xlu1 %1916, %v1031_v40  }
 0x486   :  { %1920 = vset.pattern.permute.xlu0 %v1993_v1  ;;  %v1366_v1 = vld [vmem:[%s2789_s10 + $0x38] sm:$0xff] }
 0x487   :  { %1100 = vperm.xlu0 %1920, %v2509_v57   ;;  %v1379_v57 = vunpack.c.l.bf16 %v1365_v49  ;;  %v1381_v51 = vunpack.c.l.bf16 %v1366_v1  ;;  %v1382_v32 = vunpack.c.h.bf16 %v1366_v1 }
 0x489   :  { %1918 = vset.pattern.permute.xlu2 %v1989_v16  ;;  %1919 = vset.pattern.permute.xlu1 %v1990_v20 }
 0x48a   :  { %1143 = vperm.xlu2 %1918, %v1032_v60   ;;  %1176 = vperm.xlu1 %1919, %v1032_v60  }
 0x48b   :  { %1419 = vmatpush.msrb.mxu3 %v1379_v57  ;;  %1501 = vmatpush.msra.mxu1 %v1381_v51 }
 0x48c   :  { %1542 = vmatpush.msrb.mxu2 %v1382_v32 }
 0x48f   :  { %1923 = vset.pattern.permute.xlu0 %v1990_v20 }
 0x492   :  { %1922 = vset.pattern.permute.xlu2 %v1990_v20  ;;  %1921 = vset.pattern.permute.xlu1 %v1989_v16  ;;  %v1363_v20 = vld [vmem:[%s2789_s10 + $0x20] sm:$0xff]  ;;  %v1364_v16 = vld [vmem:[%s2789_s10 + $0x28] sm:$0xff] }
 0x493   :  { %1180 = vperm.xlu2 %1922, %v1033_v31   ;;  %1148 = vperm.xlu1 %1921, %v1033_v31   ;;  %v1375_v54 = vunpack.c.l.bf16 %v1363_v20  ;;  %v1376_v2 = vunpack.c.h.bf16 %v1363_v20  ;;  %v1377_v48 = vunpack.c.l.bf16 %v1364_v16  ;;  %v1378_v50 = vunpack.c.h.bf16 %v1364_v16 }
 0x495   :  { %1420 = vmatpush.msrb.mxu3 %v1375_v54  ;;  %1461 = vmatpush.msra.mxu0 %v1376_v2  ;;  %v1194_v54 = vmul.f32 %v2546_v15, %v2325_v29  ;;  %v1195_v29 = vmul.f32 %v2554_v27, %v2332_v33 }
 0x496   :  { %1502 = vmatpush.msra.mxu1 %v1377_v48  ;;  %1543 = vmatpush.msrb.mxu2 %v1378_v50 }
 0x497   :  { %1421 = vmatpush.msrb.mxu3 %v1371_v59  ;;  %1462 = vmatpush.msra.mxu0 %v1372_v3 }
 0x498   :  { %1503 = vmatpush.msra.mxu1 %v1373_v5  ;;  %1544 = vmatpush.msrb.mxu2 %v1374_v6 }
 0x499   :  { %1422 = vmatpush.msrb.mxu3 %v1367_v58  ;;  %1463 = vmatpush.msra.mxu0 %v1368_v53 }
 0x49a   :  { %1504 = vmatpush.msra.mxu1 %v1369_v13  ;;  %1545 = vmatpush.msrb.mxu2 %v1370_v55 }
 0x49f   :  { %v1114_v10 = vpop.permute.xlu2 %1113 }
 0x4b0   :  { %v1157_v21 = vpop.permute.xlu2 %1156 }
 0x4b7   :  { %v1153_v36 = vpop.permute.xlu1 %1152 }
 0x4b8   :  { %v1183_v35 = vsel %vm1036_vm12, %v1114_v10, %v1153_v36 }
 0x4b9   :  { %v1199_v9 = vadd.f32 %v1191_v14, %v1183_v35 }
 0x4bb   :  { %v1671_v17 = vmul.f32 -1.442695, %v1199_v9 }
 0x4bd   :  { %1941 = vpow2.f32 %v1671_v17 }
 0x4c0   :  { %v1161_v43 = vpop.permute.xlu2 %1160 }
 0x4c3   :  { %v1942_v61 = vpop.eup %1941 }
 0x4c4   :  { %v1231_v56 = vadd.f32 1.0, %v1942_v61 }
 0x4c6   :  { %1943 = vrcp.f32 %v1231_v56  ;;  %v1250_v44 = vand.u32 2147483648, %v1231_v56  ;;  %v1248_v40 = vand.u32 2147483647, %v1231_v56  ;;  %vm1244_vm14 = vweird.f32 %v1231_v56 }
 0x4c8   :  { %v1119_v18 = vpop.permute.xlu1 %1118  ;;  %v1251_v22 = vor.u32 1.1754944e-38, %v1250_v44  ;;  %vm1249_vm1 = vcmp.eq.f32.partialorder %v1248_v40, 8.507059e+37 }
 0x4c9   :  { %v1184_v0 = vsel %vm1036_vm12, %v1119_v18, %v1157_v21  ;;  %v1134_v51 = vpop.permute.xlu2 %1133  ;;  %v1196_v21 = vmul.f32 %v2566_v38, %v2339_v37 }
 0x4ca   :  { %v1200_v23 = vadd.f32 %v1192_v19, %v1184_v0 }
 0x4cc   :  { %v1944_v24 = vpop.eup %1943  ;;  %v1672_v30 = vmul.f32 -1.442695, %v1200_v23 }
 0x4cd   :  { %v1240_v39 = vmul.f32 %v1944_v24, %v1231_v56  ;;  %vm1245_vm13 = vweird.f32 %v1944_v24 }
 0x4ce   :  { %1945 = vpow2.f32 %v1672_v30  ;;  %vm1246_vm15 = vmor %vm1244_vm14, %vm1245_vm13 }
 0x4cf   :  { %v1241_v42 = vsub.f32 1.0, %v1240_v39 }
 0x4d1   :  { %v1242_v4 = vmul.f32 %v1944_v24, %v1241_v42 }
 0x4d2   :  { %v2629_v15 = vpop.permute.xlu2 %1068 }
 0x4d3   :  { %v1243_v28 = vadd.f32 %v1944_v24, %v1242_v4 }
 0x4d4   :  { %v1946_v47 = vpop.eup %1945 }
 0x4d5   :  { %v1232_v11 = vadd.f32 1.0, %v1946_v47  ;;  %v1247_v60 = vsel %vm1246_vm15, %v1944_v24, %v1243_v28 }
 0x4d6   :  { %v1252_v8 = vsel %vm1249_vm1, %v1251_v22, %v1247_v60 }
 0x4d7   :  { %1947 = vrcp.f32 %v1232_v11  ;;  %1679 = vmatmul.msk.f32.vlgmr.msrb.gmra.mxu3 %vm224_vm0, %v1252_v8  ;;  %1687 = vmatmul.msk.f32.vlgmr.msra.gmra.mxu0 %vm224_vm0, %v1252_v8  ;;  %v1265_v12 = vand.u32 2147483648, %v1232_v11  ;;  %v1263_v50 = vand.u32 2147483647, %v1232_v11  ;;  %vm1259_vm3 = vweird.f32 %v1232_v11 }
 0x4d8   :  { %1695 = vmatmul.msk.f32.vlgmr.msra.gmra.mxu1 %vm224_vm0, %v1252_v8  ;;  %1703 = vmatmul.msk.f32.vlgmr.msrb.gmra.mxu2 %vm224_vm0, %v1252_v8  ;;  %v1124_v31 = vpop.permute.xlu1 %1123 }
 0x4d9   :  { %v1185_v49 = vsel %vm1036_vm12, %v1124_v31, %v1161_v43  ;;  %v1266_v6 = vor.u32 1.1754944e-38, %v1265_v12  ;;  %vm1264_vm5 = vcmp.eq.f32.partialorder %v1263_v50, 8.507059e+37 }
 0x4da   :  { %v1201_v1 = vadd.f32 %v1193_v46, %v1185_v49 }
 0x4db   :  { %v1173_v9 = vpop.permute.xlu2 %1172 }
 0x4dc   :  { %v1673_v57 = vmul.f32 -1.442695, %v1201_v1 }
 0x4dd   :  { %v1948_v25 = vpop.eup %1947 }
 0x4de   :  { %1949 = vpow2.f32 %v1673_v57  ;;  %v1129_v32 = vpop.permute.xlu0 %1128  ;;  %v1255_v20 = vmul.f32 %v1948_v25, %v1232_v11  ;;  %vm1260_vm2 = vweird.f32 %v1948_v25 }
 0x4df   :  { %vm1261_vm4 = vmor %vm1259_vm3, %vm1260_vm2 }
 0x4e0   :  { %v1256_v16 = vsub.f32 1.0, %v1255_v20 }
 0x4e1   :  { %v1165_v26 = vpop.permute.xlu1 %1164 }
 0x4e2   :  { %v1186_v2 = vsel %vm1036_vm12, %v1129_v32, %v1165_v26  ;;  %v1257_v48 = vmul.f32 %v1948_v25, %v1256_v16 }
 0x4e3   :  { %v1202_v52 = vadd.f32 %v1194_v54, %v1186_v2 }
 0x4e4   :  { %v1950_v62 = vpop.eup %1949  ;;  %v1258_v59 = vadd.f32 %v1948_v25, %v1257_v48  ;;  %v1144_v47 = vpop.permute.xlu2 %1143 }
 0x4e5   :  { %v1233_v3 = vadd.f32 1.0, %v1950_v62  ;;  %v1674_v5 = vmul.f32 -1.442695, %v1202_v52 }
 0x4e6   :  { %v1262_v34 = vsel %vm1261_vm4, %v1948_v25, %v1258_v59 }
 0x4e7   :  { %1951 = vrcp.f32 %v1233_v3  ;;  %v1169_v7 = vpop.permute.xlu0 %1168  ;;  %v1267_v58 = vsel %vm1264_vm5, %v1266_v6, %v1262_v34  ;;  %v1280_v17 = vand.u32 2147483648, %v1233_v3  ;;  %v1278_v56 = vand.u32 2147483647, %v1233_v3 }
 0x4e8   :  { %1953 = vpow2.f32 %v1674_v5  ;;  %v1187_v53 = vsel %vm1036_vm12, %v1134_v51, %v1169_v7  ;;  %1680 = vmatmul.msk.f32.gmra.mxu3 %vm224_vm0, %v1267_v58  ;;  %1688 = vmatmul.msk.f32.gmra.mxu0 %vm224_vm0, %v1267_v58  ;;  %vm1274_vm7 = vweird.f32 %v1233_v3 }
 0x4e9   :  { %v1203_v13 = vadd.f32 %v1195_v29, %v1187_v53  ;;  %1696 = vmatmul.msk.f32.gmra.mxu1 %vm224_vm0, %v1267_v58  ;;  %1704 = vmatmul.msk.f32.gmra.mxu2 %vm224_vm0, %v1267_v58  ;;  %v1281_v42 = vor.u32 1.1754944e-38, %v1280_v17  ;;  %vm1279_vm9 = vcmp.eq.f32.partialorder %v1278_v56, 8.507059e+37 }
 0x4ea   :  { %v1097_v55 = vpop.permute.xlu1 %1096 }
 0x4eb   :  { %v1675_v33 = vmul.f32 -1.442695, %v1203_v13 }
 0x4ed   :  { %v1952_v27 = vpop.eup %1951  ;;  %1955 = vpow2.f32 %v1675_v33  ;;  %v1181_v59 = vpop.permute.xlu2 %1180 }
 0x4ee   :  { %v1954_v14 = vpop.eup %1953  ;;  %v1270_v10 = vmul.f32 %v1952_v27, %v1233_v3  ;;  %vm1275_vm6 = vweird.f32 %v1952_v27 }
 0x4ef   :  { %v1234_v36 = vadd.f32 1.0, %v1954_v14  ;;  %vm1276_vm8 = vmor %vm1274_vm7, %vm1275_vm6 }
 0x4f0   :  { %v1271_v35 = vsub.f32 1.0, %v1270_v10  ;;  %v1065_v30 = vpop.permute.xlu0 %1064 }
 0x4f1   :  { %1957 = vrcp.f32 %v1234_v36  ;;  %v1109_v38 = vsel %vm1036_vm12, %v1065_v30, %v1097_v55  ;;  %v1295_v22 = vand.u32 2147483648, %v1234_v36  ;;  %v1293_v31 = vand.u32 2147483647, %v1234_v36 }
 0x4f2   :  { %v1272_v61 = vmul.f32 %v1952_v27, %v1271_v35  ;;  %v1197_v60 = vmul.f32 %v1109_v38, %v2346_v41  ;;  %vm1289_vm11 = vweird.f32 %v1234_v36 }
 0x4f3   :  { %v1956_v19 = vpop.eup %1955  ;;  %v1139_v18 = vpop.permute.xlu1 %1138  ;;  %v1296_v20 = vor.u32 1.1754944e-38, %v1295_v22  ;;  %vm1294_vm14 = vcmp.eq.f32.partialorder %v1293_v31, 8.507059e+37 }
 0x4f4   :  { %v2639_v0 = vadd.f32 1.0, %v1956_v19  ;;  %v1188_v23 = vsel %vm1036_vm12, %v1139_v18, %v1173_v9  ;;  %v1273_v24 = vadd.f32 %v1952_v27, %v1272_v61 }
 0x4f5   :  { %v1204_v39 = vadd.f32 %v1196_v21, %v1188_v23 }
 0x4f6   :  { %1959 = vrcp.f32 %v2639_v0  ;;  %v1277_v44 = vsel %vm1276_vm8, %v1952_v27, %v1273_v24  ;;  %v1310_v52 = vand.u32 2147483648, %v2639_v0  ;;  %vm1304_vm1 = vweird.f32 %v2639_v0 }
 0x4f7   :  { %v1958_v4 = vpop.eup %1957  ;;  %v1676_v40 = vmul.f32 -1.442695, %v1204_v39  ;;  %v1282_v43 = vsel %vm1279_vm9, %v1281_v42, %v1277_v44  ;;  %v1308_v62 = vand.u32 2147483647, %v2639_v0 }
 0x4f8   :  { %1681 = vmatmul.msk.f32.gmra.mxu3 %vm224_vm0, %v1282_v43  ;;  %1689 = vmatmul.msk.f32.gmra.mxu0 %vm224_vm0, %v1282_v43  ;;  %v1285_v37 = vmul.f32 %v1958_v4, %v1234_v36  ;;  %vm1290_vm10 = vweird.f32 %v1958_v4 }
 0x4f9   :  { %1961 = vpow2.f32 %v1676_v40  ;;  %1697 = vmatmul.msk.f32.gmra.mxu1 %vm224_vm0, %v1282_v43  ;;  %1705 = vmatmul.msk.f32.gmra.mxu2 %vm224_vm0, %v1282_v43  ;;  %v1101_v32 = vpop.permute.xlu0 %1100  ;;  %vm1291_vm13 = vmor %vm1289_vm11, %vm1290_vm10  ;;  %vm1309_vm3 = vcmp.eq.f32.partialorder %v1308_v62, 8.507059e+37 }
 0x4fa   :  { %v1286_v28 = vsub.f32 1.0, %v1285_v37  ;;  %v1110_v48 = vsel %vm1036_vm12, %v2629_v15, %v1101_v32  ;;  %v1311_v15 = vor.u32 1.1754944e-38, %v1310_v52 }
 0x4fb   :  { %v1198_v3 = vmul.f32 %v1110_v48, %v2353_v45 }
 0x4fc   :  { %v1960_v11 = vpop.eup %1959  ;;  %v1177_v8 = vpop.permute.xlu1 %1176  ;;  %v1287_v46 = vmul.f32 %v1958_v4, %v1286_v28 }
 0x4fd   :  { %v1189_v49 = vsel %vm1036_vm12, %v1144_v47, %v1177_v8  ;;  %v1300_v1 = vmul.f32 %v1960_v11, %v2639_v0  ;;  %vm1305_vm15 = vweird.f32 %v1960_v11  ;;  %v1973_v8 = vld [vmem:[%s2780_s0 + $0x8] sm:$0xff] }
 0x4fe   :  { %v1205_v57 = vadd.f32 %v1197_v60, %v1189_v49  ;;  %v1288_v25 = vadd.f32 %v1958_v4, %v1287_v46  ;;  %vm1306_vm2 = vmor %vm1304_vm1, %vm1305_vm15  ;;  %v1974_v49 = vld [vmem:[%s2780_s0] sm:$0xff] }
 0x4ff   :  { %v1962_v51 = vpop.eup %1961  ;;  %v1301_v16 = vsub.f32 1.0, %v1300_v1 }
 0x500   :  { %v1236_v54 = vadd.f32 1.0, %v1962_v51  ;;  %v1677_v26 = vmul.f32 -1.442695, %v1205_v57  ;;  %v1292_v41 = vsel %vm1291_vm13, %v1958_v4, %v1288_v25 }
 0x501   :  { %v1297_v12 = vsel %vm1294_vm14, %v1296_v20, %v1292_v41  ;;  %v1302_v2 = vmul.f32 %v1960_v11, %v1301_v16  ;;  %v1975_v16 = vld [vmem:[%s2780_s0 + $0x18] sm:$0xff]  ;;  %v1976_v41 = vld [vmem:[%s2780_s0 + $0x10] sm:$0xff] }
 0x502   :  { %1963 = vrcp.f32 %v1236_v54  ;;  %1682 = vmatmul.msk.f32.gmra.mxu3 %vm224_vm0, %v1297_v12  ;;  %1690 = vmatmul.msk.f32.gmra.mxu0 %vm224_vm0, %v1297_v12  ;;  %v1325_v63 = vand.u32 2147483648, %v1236_v54  ;;  %v1323_v14 = vand.u32 2147483647, %v1236_v54  ;;  %vm1319_vm4 = vweird.f32 %v1236_v54 }
 0x503   :  { %1965 = vpow2.f32 %v1677_v26  ;;  %1698 = vmatmul.msk.f32.gmra.mxu1 %vm224_vm0, %v1297_v12  ;;  %1706 = vmatmul.msk.f32.gmra.mxu2 %vm224_vm0, %v1297_v12  ;;  %v1303_v50 = vadd.f32 %v1960_v11, %v1302_v2 }
 0x504   :  { %v1326_v36 = vor.u32 1.1754944e-38, %v1325_v63  ;;  %vm1324_vm6 = vcmp.eq.f32.partialorder %v1323_v14, 8.507059e+37  ;;  %v1980_v63 = vld [vmem:[%s2780_s0 + $0x30] sm:$0xff] }
 0x505   :  { %v1149_v5 = vpop.permute.xlu1 %1148  ;;  %v1307_v34 = vsel %vm1306_vm2, %v1960_v11, %v1303_v50 }
 0x506   :  { %v1190_v6 = vsel %vm1036_vm12, %v1149_v5, %v1181_v59  ;;  %v1312_v13 = vsel %vm1309_vm3, %v1311_v15, %v1307_v34  ;;  %v1978_v34 = vld [vmem:[%s2780_s0 + $0x20] sm:$0xff] }
 0x507   :  { %v1206_v29 = vadd.f32 %v1198_v3, %v1190_v6  ;;  %v1977_v3 = vld [vmem:[%s2780_s0 + $0x28] sm:$0xff] }
 0x508   :  { %v1964_v7 = vpop.eup %1963 }
 0x509   :  { %v1966_v58 = vpop.eup %1965  ;;  %v1678_v53 = vmul.f32 -1.442695, %v1206_v29  ;;  %v1315_v55 = vmul.f32 %v1964_v7, %v1236_v54  ;;  %vm1320_vm12 = vweird.f32 %v1964_v7 }
 0x50a   :  { %v1237_v33 = vadd.f32 1.0, %v1966_v58  ;;  %1683 = vmatmul.msk.f32.gmra.mxu3 %vm224_vm0, %v1312_v13  ;;  %1691 = vmatmul.msk.f32.gmra.mxu0 %vm224_vm0, %v1312_v13  ;;  %vm1321_vm5 = vmor %vm1319_vm4, %vm1320_vm12 }
 0x50b   :  { %1967 = vpow2.f32 %v1678_v53  ;;  %1699 = vmatmul.msk.f32.gmra.mxu1 %vm224_vm0, %v1312_v13  ;;  %1707 = vmatmul.msk.f32.gmra.mxu2 %vm224_vm0, %v1312_v13  ;;  %v1316_v45 = vsub.f32 1.0, %v1315_v55  ;;  %v1979_v55 = vld [vmem:[%s2780_s0 + $0x38] sm:$0xff] }
 0x50c   :  { %1969 = vrcp.f32 %v1237_v33  ;;  %v1340_v18 = vand.u32 2147483648, %v1237_v33  ;;  %v1338_v23 = vand.u32 2147483647, %v1237_v33  ;;  %vm1334_vm8 = vweird.f32 %v1237_v33 }
 0x50d   :  { %v1317_v27 = vmul.f32 %v1964_v7, %v1316_v45 }
 0x50e   :  { %v1341_v39 = vor.u32 1.1754944e-38, %v1340_v18  ;;  %vm1339_vm10 = vcmp.eq.f32.partialorder %v1338_v23, 8.507059e+37 }
 0x50f   :  { %v1318_v10 = vadd.f32 %v1964_v7, %v1317_v27 }
 0x511   :  { %v1968_v35 = vpop.eup %1967  ;;  %v1322_v9 = vsel %vm1321_vm5, %v1964_v7, %v1318_v10 }
 0x512   :  { %v1970_v17 = vpop.eup %1969  ;;  %v1238_v61 = vadd.f32 1.0, %v1968_v35  ;;  %v1327_v56 = vsel %vm1324_vm6, %v1326_v36, %v1322_v9  ;;  %v1981_v9 = vld [vmem:[%s2780_s0 + $0x48] sm:$0xff] }
 0x513   :  { %1684 = vmatmul.msk.f32.gmra.mxu3 %vm224_vm0, %v1327_v56  ;;  %1692 = vmatmul.msk.f32.gmra.mxu0 %vm224_vm0, %v1327_v56  ;;  %v1330_v19 = vmul.f32 %v1970_v17, %v1237_v33  ;;  %vm1335_vm7 = vweird.f32 %v1970_v17 }
 0x514   :  { %1971 = vrcp.f32 %v1238_v61  ;;  %1700 = vmatmul.msk.f32.gmra.mxu1 %vm224_vm0, %v1327_v56  ;;  %1708 = vmatmul.msk.f32.gmra.mxu2 %vm224_vm0, %v1327_v56  ;;  %vm1336_vm9 = vmor %vm1334_vm8, %vm1335_vm7  ;;  %v1355_v43 = vand.u32 2147483648, %v1238_v61  ;;  %v1353_v38 = vand.u32 2147483647, %v1238_v61  ;;  %vm1349_vm13 = vweird.f32 %v1238_v61 }
 0x515   :  { %v1331_v21 = vsub.f32 1.0, %v1330_v19  ;;  %v1982_v19 = vld [vmem:[%s2780_s0 + $0x40] sm:$0xff] }
 0x516   :  { %v1356_v47 = vor.u32 1.1754944e-38, %v1355_v43  ;;  %vm1354_vm15 = vcmp.eq.f32.partialorder %v1353_v38, 8.507059e+37 }
 0x517   :  { %v1332_v0 = vmul.f32 %v1970_v17, %v1331_v21 }
 0x519   :  { %v1333_v24 = vadd.f32 %v1970_v17, %v1332_v0 }
 0x51a   :  { %v1972_v30 = vpop.eup %1971 }
 0x51b   :  { %v1337_v42 = vsel %vm1336_vm9, %v1970_v17, %v1333_v24  ;;  %v1345_v44 = vmul.f32 %v1972_v30, %v1238_v61  ;;  %vm1350_vm11 = vweird.f32 %v1972_v30 }
 0x51c   :  { %v1342_v4 = vsel %vm1339_vm10, %v1341_v39, %v1337_v42  ;;  %vm1351_vm14 = vmor %vm1349_vm13, %vm1350_vm11 }
 0x51d   :  { %1685 = vmatmul.msk.f32.gmra.mxu3 %vm224_vm0, %v1342_v4  ;;  %1693 = vmatmul.msk.f32.gmra.mxu0 %vm224_vm0, %v1342_v4  ;;  %v1346_v40 = vsub.f32 1.0, %v1345_v44 }
 0x51e   :  { %1701 = vmatmul.msk.f32.gmra.mxu1 %vm224_vm0, %v1342_v4  ;;  %1709 = vmatmul.msk.f32.gmra.mxu2 %vm224_vm0, %v1342_v4  ;;  %v1984_v4 = vld [vmem:[%s2780_s0 + $0x50] sm:$0xff] }
 0x51f   :  { %v1347_v37 = vmul.f32 %v1972_v30, %v1346_v40 }
 0x521   :  { %v1348_v28 = vadd.f32 %v1972_v30, %v1347_v37 }
 0x523   :  { %v1352_v22 = vsel %vm1351_vm14, %v1972_v30, %v1348_v28  ;;  %v1983_v30 = vld [vmem:[%s2780_s0 + $0x58] sm:$0xff] }
 0x524   :  { %v1357_v11 = vsel %vm1354_vm15, %v1356_v47, %v1352_v22  ;;  %v1985_v47 = vld [vmem:[%s2780_s0 + $0x68] sm:$0xff] }
 0x525   :  { %1686 = vmatmul.msk.f32.gmra.mxu3 %vm224_vm0, %v1357_v11  ;;  %1694 = vmatmul.msk.f32.gmra.mxu0 %vm224_vm0, %v1357_v11 }
 0x526   :  { %1702 = vmatmul.msk.f32.gmra.mxu1 %vm224_vm0, %v1357_v11  ;;  %1710 = vmatmul.msk.f32.gmra.mxu2 %vm224_vm0, %v1357_v11 }
 0x554   :  { %v1465_v60 = vpop.f32.mrf.mxu0 }
 0x555   :  { %v1572_v46 = vmul.f32 %v1973_v8, %v1465_v60  ;;  %v1506_v25 = vpop.f32.mrf.mxu1  ;;  %v1986_v8 = vld [vmem:[%s2780_s0 + $0x60] sm:$0xff] }
 0x55a   :  { %v1424_v31 = vpop.f32.mrf.mxu3 }
 0x55b   :  { %v1571_v1 = vmul.f32 %v1974_v49, %v1424_v31  ;;  %v1547_v57 = vpop.f32.mrf.mxu2 }
 0x55c   :  { %v1588_v51 = vmul.f32 %v1572_v46, %v1547_v57 }
 0x55d   :  { %v1587_v32 = vmul.f32 %v1571_v1, %v1506_v25  ;;  %v1987_v25 = vld [vmem:[%s2780_s0 + $0x78] sm:$0xff] }
 0x55e   :  { %1604 = vst [vmem:[%s2790_s11 + $0x8] sm:$0xff] %v1588_v51 }
 0x55f   :  { %1603 = vst [vmem:[%s2790_s11] sm:$0xff] %v1587_v32 }
 0x565   :  { %v1468_v20 = vpop.f32.mrf.mxu0 }
 0x566   :  { %v1574_v54 = vmul.f32 %v1975_v16, %v1468_v20  ;;  %v1509_v48 = vpop.f32.mrf.mxu1  ;;  %v1988_v20 = vld [vmem:[%s2780_s0 + $0x70] sm:$0xff] }
 0x56b   :  { %v1427_v26 = vpop.f32.mrf.mxu3 }
 0x56c   :  { %v1573_v12 = vmul.f32 %v1976_v41, %v1427_v26  ;;  %v1550_v2 = vpop.f32.mrf.mxu2 }
 0x56d   :  { %v1590_v50 = vmul.f32 %v1574_v54, %v1550_v2 }
 0x56e   :  { %v1589_v52 = vmul.f32 %v1573_v12, %v1509_v48 }
 0x56f   :  { %1606 = vst [vmem:[%s2790_s11 + $0x18] sm:$0xff] %v1590_v50 }
 0x570   :  { %1605 = vst [vmem:[%s2790_s11 + $0x10] sm:$0xff] %v1589_v52 }
 0x575   :  { %v1471_v62 = vpop.f32.mrf.mxu0 }
 0x576   :  { %v1512_v59 = vpop.f32.mrf.mxu1  ;;  %v1576_v5 = vmul.f32 %v1977_v3, %v1471_v62 }
 0x57b   :  { %v1430_v6 = vpop.f32.mrf.mxu3 }
 0x57c   :  { %v1575_v29 = vmul.f32 %v1978_v34, %v1430_v6  ;;  %v1553_v15 = vpop.f32.mrf.mxu2 }
 0x57d   :  { %v1592_v7 = vmul.f32 %v1576_v5, %v1553_v15 }
 0x57e   :  { %v1591_v58 = vmul.f32 %v1575_v29, %v1512_v59 }
 0x57f   :  { %1608 = vst [vmem:[%s2790_s11 + $0x28] sm:$0xff] %v1592_v7  ;;  %v1474_v53 = vpop.f32.mrf.mxu0 }
 0x580   :  { %1607 = vst [vmem:[%s2790_s11 + $0x20] sm:$0xff] %v1591_v58  ;;  %v1515_v13 = vpop.f32.mrf.mxu1  ;;  %v1578_v33 = vmul.f32 %v1979_v55, %v1474_v53 }
 0x585   :  { %v1433_v45 = vpop.f32.mrf.mxu3 }
 0x586   :  { %v1577_v27 = vmul.f32 %v1980_v63, %v1433_v45  ;;  %v1556_v14 = vpop.f32.mrf.mxu2 }
 0x587   :  { %v1594_v10 = vmul.f32 %v1578_v33, %v1556_v14  ;;  %v1477_v35 = vpop.f32.mrf.mxu0 }
 0x588   :  { %v1593_v36 = vmul.f32 %v1577_v27, %v1515_v13  ;;  %v1580_v17 = vmul.f32 %v1981_v9, %v1477_v35  ;;  %v1518_v56 = vpop.f32.mrf.mxu1 }
 0x589   :  { %1610 = vst [vmem:[%s2790_s11 + $0x38] sm:$0xff] %v1594_v10 }
 0x58a   :  { %1609 = vst [vmem:[%s2790_s11 + $0x30] sm:$0xff] %v1593_v36 }
 0x58d   :  { %v1436_v61 = vpop.f32.mrf.mxu3 }
 0x58e   :  { %v1579_v21 = vmul.f32 %v1982_v19, %v1436_v61  ;;  %v1559_v18 = vpop.f32.mrf.mxu2 }
 0x58f   :  { %v1596_v0 = vmul.f32 %v1580_v17, %v1559_v18 }
 0x590   :  { %v1595_v23 = vmul.f32 %v1579_v21, %v1518_v56  ;;  %v1480_v24 = vpop.f32.mrf.mxu0 }
 0x591   :  { %1612 = vst [vmem:[%s2790_s11 + $0x48] sm:$0xff] %v1596_v0  ;;  %v1582_v39 = vmul.f32 %v1983_v30, %v1480_v24  ;;  %v1521_v42 = vpop.f32.mrf.mxu1 }
 0x592   :  { %1611 = vst [vmem:[%s2790_s11 + $0x40] sm:$0xff] %v1595_v23 }
 0x596   :  { %v1439_v44 = vpop.f32.mrf.mxu3 }
 0x597   :  { %v1581_v40 = vmul.f32 %v1984_v4, %v1439_v44  ;;  %v1562_v43 = vpop.f32.mrf.mxu2 }
 0x598   :  { %v1598_v37 = vmul.f32 %v1582_v39, %v1562_v43 }
 0x599   :  { %v1597_v38 = vmul.f32 %v1581_v40, %v1521_v42 }
 0x59a   :  { %1614 = vst [vmem:[%s2790_s11 + $0x58] sm:$0xff] %v1598_v37  ;;  %v1483_v28 = vpop.f32.mrf.mxu0 }
 0x59b   :  { %1613 = vst [vmem:[%s2790_s11 + $0x50] sm:$0xff] %v1597_v38  ;;  %v1584_v22 = vmul.f32 %v1985_v47, %v1483_v28  ;;  %v1524_v11 = vpop.f32.mrf.mxu1 }
 0x5a0   :  { %v1442_v60 = vpop.f32.mrf.mxu3 }
 0x5a1   :  { %v1583_v46 = vmul.f32 %v1986_v8, %v1442_v60  ;;  %v1565_v31 = vpop.f32.mrf.mxu2 }
 0x5a2   :  { %v1600_v49 = vmul.f32 %v1584_v22, %v1565_v31  ;;  %v1486_v57 = vpop.f32.mrf.mxu0 }
 0x5a3   :  { %v1599_v1 = vmul.f32 %v1583_v46, %v1524_v11  ;;  %v1586_v51 = vmul.f32 %v1987_v25, %v1486_v57  ;;  %v1527_v26 = vpop.f32.mrf.mxu1 }
 0x5a4   :  { %1616 = vst [vmem:[%s2790_s11 + $0x68] sm:$0xff] %v1600_v49 }
 0x5a5   :  { %1615 = vst [vmem:[%s2790_s11 + $0x60] sm:$0xff] %v1599_v1 }
 0x5a8   :  { %v1445_v32 = vpop.f32.mrf.mxu3 }
 0x5a9   :  { %v1585_v16 = vmul.f32 %v1988_v20, %v1445_v32  ;;  %v1568_v54 = vpop.f32.mrf.mxu2 }
 0x5aa   :  { %v1602_v41 = vmul.f32 %v1586_v51, %v1568_v54 }
 0x5ab   :  { %v1601_v12 = vmul.f32 %v1585_v16, %v1527_v26 }
 0x5ac   :  { %1618 = vst [vmem:[%s2790_s11 + $0x78] sm:$0xff] %v1602_v41 }
 0x5ad   :  { %1617 = vst [vmem:[%s2790_s11 + $0x70] sm:$0xff] %v1601_v12 }

</bundles_post_ra>
